<compile_context>
chip_gen: v7x
topology: tpu7x:2x2x1
jax: 0.10.0
libtpu: 0.0.40
codegen_flags: <defaults>
</compile_context>

<pallas_src>
import math
import functools

import jax
import jax.numpy as jnp
from jax.experimental import pallas as pl
from jax.experimental.pallas import tpu as pltpu


# ----------------------------------------------------------------------------
# small math helpers (kernel-safe: abs / exp / mul / where / rsqrt / reciprocal)
# ----------------------------------------------------------------------------
def _erf_kernel(x):
    # Abramowitz & Stegun 7.1.26 rational approximation (|err| < 1.5e-7).
    a1, a2, a3, a4, a5 = 0.254829592, -0.284496736, 1.421413741, -1.453152027, 1.061405429
    p = 0.3275911
    sgn = jnp.where(x >= 0.0, 1.0, -1.0)
    ax = jnp.abs(x)
    t = pl.reciprocal(1.0 + p * ax, approx=True)          # EUP, off the VALU
    poly = ((((a5 * t + a4) * t + a3) * t + a2) * t + a1) * t
    return sgn * (1.0 - poly * jnp.exp(-ax * ax))


def _gelu_exact(x):
    # PyTorch nn.GELU() default: 0.5*x*(1+erf(x/sqrt(2)))
    return 0.5 * x * (1.0 + _erf_kernel(x * 0.7071067811865476))


def _layernorm(x, w, b, eps=1e-5):
    mu = jnp.mean(x, axis=-1, keepdims=True)
    xc = x - mu
    var = jnp.mean(xc * xc, axis=-1, keepdims=True)
    return xc * jax.lax.rsqrt(var + eps) * w + b


# ----------------------------------------------------------------------------
# Pallas kernel: the ENTIRE transformer stack.  grid=(n_layers,); the (B*S, H)
# activation block lives in a VMEM scratch across layers, weights are blocked
# per-layer (stacked along the leading L axis).
# ----------------------------------------------------------------------------
def _blocks_kernel(n_heads, B, S,
                   x_ref, mask_ref,
                   wqkv_ref, bqkv_ref, wp_ref, bp_ref,
                   ln1w_ref, ln1b_ref,
                   w1_ref, b1_ref, w2_ref, b2_ref,
                   ln2w_ref, ln2b_ref,
                   out_ref,
                   h_scr, attn_scr):
    layer = pl.program_id(0)

    @pl.when(layer == 0)
    def _():
        h_scr[...] = x_ref[...]                       # load activations once

    x = h_scr[...]                                    # (B*S, H) fp32
    H = x.shape[-1]
    D = H // n_heads
    scale = 1.0 / math.sqrt(D)

    # Fused QKV: one bf16 MXU matmul with N = 3H, fp32 accumulate + bias.
    qkv = jnp.dot(x.astype(jnp.bfloat16), wqkv_ref[0],
                  preferred_element_type=jnp.float32) + bqkv_ref[0]
    qkv16 = qkv.astype(jnp.bfloat16)                  # (B*S, 3H)

    mask = mask_ref[...]                              # (S, S) additive, 0 / -1e30

    # Per (batch, head) attention; outputs written straight into VMEM scratch
    # slices (no concatenate / relayout).  Static, small loops.
    for b in range(B):
        r0 = b * S
        for h in range(n_heads):
            c0 = h * D
            qh = qkv16[r0:r0 + S, c0:c0 + D]
            kh = qkv16[r0:r0 + S, H + c0:H + c0 + D]
            vh = qkv16[r0:r0 + S, 2 * H + c0:2 * H + c0 + D]
            s = jax.lax.dot_general(qh, kh, (((1,), (1,)), ((), ())),
                                    preferred_element_type=jnp.float32)
            s = s * scale + mask
            s = s - jnp.max(s, axis=-1, keepdims=True)
            e = jnp.exp(s)
            p = e * pl.reciprocal(jnp.sum(e, axis=-1, keepdims=True), approx=True)
            attn_scr[r0:r0 + S, c0:c0 + D] = jnp.dot(
                p.astype(jnp.bfloat16), vh, preferred_element_type=jnp.float32)

    attn = jnp.dot(attn_scr[...].astype(jnp.bfloat16), wp_ref[0],
                   preferred_element_type=jnp.float32) + bp_ref[0]

    # residual + LN1 (fp32)
    x = _layernorm(x + attn, ln1w_ref[0], ln1b_ref[0])

    # MLP: Linear(H,4H) -> GELU(exact) -> Linear(4H,H), bf16 matmuls / fp32 acc
    hmid = jnp.dot(x.astype(jnp.bfloat16), w1_ref[0],
                   preferred_element_type=jnp.float32) + b1_ref[0]
    hmid = _gelu_exact(hmid)
    hmid = jnp.dot(hmid.astype(jnp.bfloat16), w2_ref[0],
                   preferred_element_type=jnp.float32) + b2_ref[0]

    # residual + LN2 (fp32)
    x = _layernorm(x + hmid, ln2w_ref[0], ln2b_ref[0])
    h_scr[...] = x

    @pl.when(layer == pl.num_programs(0) - 1)
    def _():
        out_ref[...] = x


def run_blocks(x2d, p, n_heads):
    BS, H = x2d.shape
    L = p['blk_wqkv'].shape[0]
    F = p['blk_w1'].shape[2]
    S = p['causal_mask'].shape[0]
    B = BS // S

    def wspec(d1, d2):
        return pl.BlockSpec((1, d1, d2), lambda l: (l, 0, 0))

    kernel = functools.partial(_blocks_kernel, n_heads, B, S)
    return pl.pallas_call(
        kernel,
        out_shape=jax.ShapeDtypeStruct((BS, H), jnp.float32),
        grid=(L,),
        in_specs=[
            pl.BlockSpec((BS, H), lambda l: (0, 0)),      # activations (read @ l==0)
            pl.BlockSpec((S, S), lambda l: (0, 0)),       # additive causal mask
            wspec(H, 3 * H), wspec(1, 3 * H),             # fused qkv
            wspec(H, H), wspec(1, H),                     # out proj
            wspec(1, H), wspec(1, H),                     # ln1
            wspec(H, F), wspec(1, F),                     # mlp fc1
            wspec(F, H), wspec(1, H),                     # mlp fc2
            wspec(1, H), wspec(1, H),                     # ln2
        ],
        out_specs=pl.BlockSpec((BS, H), lambda l: (0, 0)),
        scratch_shapes=[pltpu.VMEM((BS, H), jnp.float32),   # resident activations
                        pltpu.VMEM((BS, H), jnp.float32)],  # attention heads buffer
        compiler_params=pltpu.CompilerParams(
            dimension_semantics=("arbitrary",)),            # layers are sequential
    )(x2d, p['causal_mask'],
      p['blk_wqkv'], p['blk_bqkv'], p['blk_wp'], p['blk_bp'],
      p['blk_ln1w'], p['blk_ln1b'],
      p['blk_w1'], p['blk_b1'], p['blk_w2'], p['blk_b2'],
      p['blk_ln2w'], p['blk_ln2b'])


# ----------------------------------------------------------------------------
# Pallas kernel: prediction heads.  Whole batch flattened to (B*T, H); the
# state and rtg heads are fused into a single (H, sd+1) matmul.
# ----------------------------------------------------------------------------
def _head_kernel(hs_ref, ha_ref,
                 wact_ref, bact_ref, wsr_ref, bsr_ref,
                 low_ref, high_ref,
                 ap_ref, sr_ref):
    hs = hs_ref[...]        # (B*T, H) hidden at state tokens  -> action head
    ha = ha_ref[...]        # (B*T, H) hidden at action tokens -> state + rtg head

    act = jnp.tanh(jnp.dot(hs.astype(jnp.bfloat16), wact_ref[...],
                           preferred_element_type=jnp.float32) + bact_ref[...])
    low = low_ref[...]
    high = high_ref[...]
    # _norm_action: low + (a + 1) * (high - low) / 2
    ap_ref[...] = low + (act + 1.0) * (high - low) * 0.5
    sr_ref[...] = jnp.dot(ha.astype(jnp.bfloat16), wsr_ref[...],
                          preferred_element_type=jnp.float32) + bsr_ref[...]


def run_heads(hs2d, ha2d, p):
    BT, H = hs2d.shape
    ad = p['predict_action_w'].shape[1]
    srd = p['predict_sr_w'].shape[1]          # state_dim + 1 (fused state|rtg)

    def full(shape):
        return pl.BlockSpec(shape, lambda i: (0,) * len(shape))

    return pl.pallas_call(
        _head_kernel,
        out_shape=(jax.ShapeDtypeStruct((BT, ad), jnp.float32),
                   jax.ShapeDtypeStruct((BT, srd), jnp.float32)),
        grid=(1,),
        in_specs=[full((BT, H)), full((BT, H)),
                  full((H, ad)), full((1, ad)),
                  full((H, srd)), full((1, srd)),
                  full((1, ad)), full((1, ad))],
        out_specs=(full((BT, ad)), full((BT, srd))),
        compiler_params=pltpu.CompilerParams(dimension_semantics=("arbitrary",)),
    )(hs2d, ha2d,
      p['predict_action_w'], p['predict_action_b'],
      p['predict_sr_w'], p['predict_sr_b'],
      p['action_low'], p['action_high'])


# ----------------------------------------------------------------------------
# Full DecisionTransformer forward (thin JAX glue around the two Pallas calls)
# ----------------------------------------------------------------------------
def decision_transformer_forward(params, states, actions, rewards_to_go,
                                 timesteps, task_id=0):
    # _norm_state / _norm_reward_to_go (elementwise glue)
    states = (states - params['state_mean']) / params['state_std']
    rewards_to_go = rewards_to_go / params['reward_scale']

    B, T, _ = states.shape
    H = params['embed_state_w'].shape[1]

    # nn.Embedding lookup (gather) stays in JAX glue.
    time_emb = jnp.take(params['embed_timestep'], timesteps, axis=0)       # (B,T,H)

    # embedding projections + token interleave (tiny matmuls, glue)
    se = states @ params['embed_state_w'] + params['embed_state_b'] + time_emb
    ae = actions @ params['embed_action_w'] + params['embed_action_b'] + time_emb
    re = rewards_to_go @ params['embed_rtg_w'] + params['embed_rtg_b'] + time_emb
    # per-timestep order: (rtg, state, action)  -> (B, 3T, H)
    h = jnp.stack([re, se, ae], axis=2).reshape(B, 3 * T, H)
    h = _layernorm(h, params['embed_ln_w'], params['embed_ln_b'])

    # fused transformer stack (single Pallas call, activations VMEM-resident)
    h2d = run_blocks(h.reshape(B * 3 * T, H), params, params['n_heads'])

    # TODO(synk): expert_blocks path (n_expert_blocks > 0) not instantiated (default 0).

    h = h2d.reshape(B, T, 3, H)
    hs = h[:, :, 1, :].reshape(B * T, H)   # hidden at state tokens  -> action preds
    ha = h[:, :, 2, :].reshape(B * T, H)   # hidden at action tokens -> state/rtg preds

    ap, sr = run_heads(hs, ha, params)
    sd = params['predict_sr_w'].shape[1] - 1
    action_preds = ap.reshape(B, T, -1)
    state_preds = sr[:, :sd].reshape(B, T, sd)
    rtg_preds = sr[:, sd:].reshape(B, T, 1)
    return state_preds, action_preds, rtg_preds


# ----------------------------------------------------------------------------
# deterministic parameter construction (weights bf16, biases/LN fp32)
# ----------------------------------------------------------------------------
def init_params(key, state_dim, action_dim, hidden_dim, n_heads, n_blocks,
                max_timestep, context_len):
    keys = iter(jax.random.split(key, 128))

    def unif(shape, fan_in):
        bound = 1.0 / math.sqrt(fan_in)
        return jax.random.uniform(next(keys), shape, jnp.float32, -bound, bound)

    H, F, L = hidden_dim, 4 * hidden_dim, n_blocks
    S = 3 * context_len

    p = {'n_heads': n_heads}
    p['embed_timestep'] = jax.random.normal(next(keys), (max_timestep, H),
                                            jnp.float32) * 0.02
    p['embed_state_w'] = unif((state_dim, H), state_dim)
    p['embed_state_b'] = unif((1, H), state_dim)
    p['embed_action_w'] = unif((action_dim, H), action_dim)
    p['embed_action_b'] = unif((1, H), action_dim)
    p['embed_rtg_w'] = unif((1, H), 1)
    p['embed_rtg_b'] = unif((1, H), 1)
    p['embed_ln_w'] = jnp.ones((1, H), jnp.float32)
    p['embed_ln_b'] = jnp.zeros((1, H), jnp.float32)

    # per-layer weights stacked along a leading L axis (grid iterates over L)
    p['blk_wqkv'] = unif((L, H, 3 * H), H).astype(jnp.bfloat16)   # fused q|k|v
    p['blk_bqkv'] = unif((L, 1, 3 * H), H)
    p['blk_wp'] = unif((L, H, H), H).astype(jnp.bfloat16)
    p['blk_bp'] = unif((L, 1, H), H)
    p['blk_ln1w'] = jnp.ones((L, 1, H), jnp.float32)
    p['blk_ln1b'] = jnp.zeros((L, 1, H), jnp.float32)
    p['blk_w1'] = unif((L, H, F), H).astype(jnp.bfloat16)
    p['blk_b1'] = unif((L, 1, F), H)
    p['blk_w2'] = unif((L, F, H), F).astype(jnp.bfloat16)
    p['blk_b2'] = unif((L, 1, H), F)
    p['blk_ln2w'] = jnp.ones((L, 1, H), jnp.float32)
    p['blk_ln2b'] = jnp.zeros((L, 1, H), jnp.float32)

    p['predict_action_w'] = unif((H, action_dim), H).astype(jnp.bfloat16)
    p['predict_action_b'] = unif((1, action_dim), H)
    # fused [state | rtg] head -> single lane-denser matmul/store
    p['predict_sr_w'] = unif((H, state_dim + 1), H).astype(jnp.bfloat16)
    p['predict_sr_b'] = unif((1, state_dim + 1), H)

    p['state_mean'] = jnp.zeros((state_dim,), jnp.float32)
    p['state_std'] = jnp.ones((state_dim,), jnp.float32)
    p['reward_scale'] = 100.0
    p['action_low'] = -jnp.ones((1, action_dim), jnp.float32)
    p['action_high'] = jnp.ones((1, action_dim), jnp.float32)

    # additive causal mask (0 = keep, -1e30 = masked), built once on host
    row = jnp.arange(S)[:, None]
    col = jnp.arange(S)[None, :]
    p['causal_mask'] = jnp.where(row >= col, 0.0, -1e30).astype(jnp.float32)
    return p


# ----------------------------------------------------------------------------
if __name__ == "__main__":
    B, T = 2, 8
    state_dim, action_dim = 8, 4
    hidden_dim, n_heads, n_blocks = 32, 2, 2
    max_timestep = 16

    key = jax.random.PRNGKey(0)
    kp, ks, ka, kr, kt = jax.random.split(key, 5)

    params = init_params(kp, state_dim, action_dim, hidden_dim, n_heads,
                         n_blocks, max_timestep, context_len=T)

    states = jax.random.normal(ks, (B, T, state_dim), jnp.float32)
    actions = jax.random.normal(ka, (B, T, action_dim), jnp.float32)
    rewards_to_go = jax.random.normal(kr, (B, T, 1), jnp.float32)
    timesteps = jax.random.randint(kt, (B, T), 0, max_timestep)

    state_preds, action_preds, rtg_preds = decision_transformer_forward(
        params, states, actions, rewards_to_go, timesteps, task_id=0)

    jax.block_until_ready((state_preds, action_preds, rtg_preds))
    assert state_preds.shape == (B, T, state_dim)
    assert action_preds.shape == (B, T, action_dim)
    assert rtg_preds.shape == (B, T, 1)
    assert bool(jnp.all(jnp.isfinite(state_preds)))
    assert bool(jnp.all(jnp.isfinite(action_preds)))
    assert bool(jnp.all(jnp.isfinite(rtg_preds)))
    print("KERNEL_OK")
</pallas_src>

<mosaic_0001>
module attributes {stable_mosaic.version = 11 : i64} {
  func.func @_blocks_kernel(%arg0: i32, %arg1: memref<48x32xf32, #tpu.memory_space<vmem>>, %arg2: memref<24x24xf32, #tpu.memory_space<vmem>>, %arg3: memref<1x32x96xbf16, #tpu.memory_space<vmem>>, %arg4: memref<1x1x96xf32, #tpu.memory_space<vmem>>, %arg5: memref<1x32x32xbf16, #tpu.memory_space<vmem>>, %arg6: memref<1x1x32xf32, #tpu.memory_space<vmem>>, %arg7: memref<1x1x32xf32, #tpu.memory_space<vmem>>, %arg8: memref<1x1x32xf32, #tpu.memory_space<vmem>>, %arg9: memref<1x32x128xbf16, #tpu.memory_space<vmem>>, %arg10: memref<1x1x128xf32, #tpu.memory_space<vmem>>, %arg11: memref<1x128x32xbf16, #tpu.memory_space<vmem>>, %arg12: memref<1x1x32xf32, #tpu.memory_space<vmem>>, %arg13: memref<1x1x32xf32, #tpu.memory_space<vmem>>, %arg14: memref<1x1x32xf32, #tpu.memory_space<vmem>>, %arg15: memref<48x32xf32, #tpu.memory_space<vmem>>, %arg16: memref<48x32xf32, #tpu.memory_space<vmem>>, %arg17: memref<48x32xf32, #tpu.memory_space<vmem>>) attributes {dimension_semantics = [#tpu.dimension_semantics<arbitrary>], iteration_bounds = array<i64: 2>, scalar_prefetch = 0 : i64, scratch_operands = 2 : i64, tpu.core_type = #tpu.core_type<tc>, window_params = [{pipeline_mode = #tpu.pipeline_mode<synchronous>, transform_indices = @transform_0, window_bounds = array<i64: 48, 32>}, {pipeline_mode = #tpu.pipeline_mode<synchronous>, transform_indices = @transform_1, window_bounds = array<i64: 24, 24>}, {transform_indices = @transform_2, window_bounds = array<i64: 1, 32, 96>}, {transform_indices = @transform_3, window_bounds = array<i64: 1, 1, 96>}, {transform_indices = @transform_4, window_bounds = array<i64: 1, 32, 32>}, {transform_indices = @transform_5, window_bounds = array<i64: 1, 1, 32>}, {transform_indices = @transform_6, window_bounds = array<i64: 1, 1, 32>}, {transform_indices = @transform_7, window_bounds = array<i64: 1, 1, 32>}, {transform_indices = @transform_8, window_bounds = array<i64: 1, 32, 128>}, {transform_indices = @transform_9, window_bounds = array<i64: 1, 1, 128>}, {transform_indices = @transform_10, window_bounds = array<i64: 1, 128, 32>}, {transform_indices = @transform_11, window_bounds = array<i64: 1, 1, 32>}, {transform_indices = @transform_12, window_bounds = array<i64: 1, 1, 32>}, {transform_indices = @transform_13, window_bounds = array<i64: 1, 1, 32>}, {pipeline_mode = #tpu.pipeline_mode<synchronous>, transform_indices = @transform_14, window_bounds = array<i64: 48, 32>}]} {
    %c0_i32 = arith.constant 0 : i32
    %0 = arith.cmpi eq, %arg0, %c0_i32 : i32
    %1 = arith.extui %0 : i1 to i32
    %c0_i32_0 = arith.constant 0 : i32
    %2 = arith.cmpi ne, %1, %c0_i32_0 : i32
    scf.if %2 {
      %c0_99 = arith.constant 0 : index
      %c0_100 = arith.constant 0 : index
      %213 = vector.load %arg1[%c0_99, %c0_100] : memref<48x32xf32, #tpu.memory_space<vmem>>, vector<48x32xf32>
      %c0_101 = arith.constant 0 : index
      %c0_102 = arith.constant 0 : index
      %214 = vector.load %arg16[%c0_101, %c0_102] : memref<48x32xf32, #tpu.memory_space<vmem>>, vector<48x32xf32>
      tpu.vector_store %arg16[%c0_101, %c0_102], %213 {strides = array<i32>} : memref<48x32xf32, #tpu.memory_space<vmem>>, vector<48x32xf32>,
    } else {
    }
    %c0 = arith.constant 0 : index
    %c0_1 = arith.constant 0 : index
    %3 = vector.load %arg16[%c0, %c0_1] : memref<48x32xf32, #tpu.memory_space<vmem>>, vector<48x32xf32>
    %4 = arith.truncf %3 : vector<48x32xf32> to vector<48x32xbf16>
    %c0_2 = arith.constant 0 : index
    %c0_3 = arith.constant 0 : index
    %c0_4 = arith.constant 0 : index
    %5 = vector.load %arg3[%c0_2, %c0_3, %c0_4] : memref<1x32x96xbf16, #tpu.memory_space<vmem>>, vector<1x32x96xbf16>
    %6 = vector.shape_cast %5 : vector<1x32x96xbf16> to vector<32x96xbf16>
    %cst = arith.constant dense<0.000000e+00> : vector<48x96xf32>
    %7 = tpu.matmul %4, %6, %cst {dimension_numbers = #tpu.dot_dimension_numbers<[1], [0], [0], [1], [0, 0, 1, 1], [], []>} : vector<48x32xbf16>, vector<32x96xbf16>, vector<48x96xf32> -> vector<48x96xf32>
    %c0_5 = arith.constant 0 : index
    %c0_6 = arith.constant 0 : index
    %c0_7 = arith.constant 0 : index
    %8 = vector.load %arg4[%c0_5, %c0_6, %c0_7] : memref<1x1x96xf32, #tpu.memory_space<vmem>>, vector<1x1x96xf32>
    %9 = vector.shape_cast %8 : vector<1x1x96xf32> to vector<1x96xf32>
    %10 = vector.broadcast %9 : vector<1x96xf32> to vector<48x96xf32>
    %11 = arith.addf %7, %10 : vector<48x96xf32>
    %12 = arith.truncf %11 : vector<48x96xf32> to vector<48x96xbf16>
    %c0_8 = arith.constant 0 : index
    %c0_9 = arith.constant 0 : index
    %13 = vector.load %arg2[%c0_8, %c0_9] : memref<24x24xf32, #tpu.memory_space<vmem>>, vector<24x24xf32>
    %14 = vector.extract_strided_slice %12 {offsets = [0, 0], sizes = [24, 16], strides = [1, 1]} : vector<48x96xbf16> to vector<24x16xbf16>
    %15 = vector.extract_strided_slice %12 {offsets = [0, 32], sizes = [24, 16], strides = [1, 1]} : vector<48x96xbf16> to vector<24x16xbf16>
    %16 = vector.extract_strided_slice %12 {offsets = [0, 64], sizes = [24, 16], strides = [1, 1]} : vector<48x96xbf16> to vector<24x16xbf16>
    %cst_10 = arith.constant dense<0.000000e+00> : vector<24x24xf32>
    %17 = tpu.matmul %14, %15, %cst_10 {dimension_numbers = #tpu.dot_dimension_numbers<[1], [1], [0], [0], [0, 0, 1, 0], [], []>} : vector<24x16xbf16>, vector<24x16xbf16>, vector<24x24xf32> -> vector<24x24xf32>
    %cst_11 = arith.constant 2.500000e-01 : f32
    %18 = vector.broadcast %cst_11 : f32 to vector<24x24xf32>
    %19 = arith.mulf %17, %18 : vector<24x24xf32>
    %20 = arith.addf %19, %13 : vector<24x24xf32>
    %cst_12 = arith.constant dense<0xFF800000> : vector<24xf32>
    %21 = vector.multi_reduction <maximumf>, %20, %cst_12 [1] : vector<24x24xf32> to vector<24xf32>
    %22 = vector.shape_cast %21 : vector<24xf32> to vector<24x1xf32>
    %23 = vector.broadcast %22 : vector<24x1xf32> to vector<24x24xf32>
    %24 = arith.subf %20, %23 : vector<24x24xf32>
    %25 = math.exp %24 : vector<24x24xf32>
    %cst_13 = arith.constant dense<0.000000e+00> : vector<24xf32>
    %26 = vector.multi_reduction <add>, %25, %cst_13 [1] : vector<24x24xf32> to vector<24xf32>
    %27 = vector.shape_cast %26 : vector<24xf32> to vector<24x1xf32>
    %28 = tpu.reciprocal %27 {approx = true} : vector<24x1xf32> -> vector<24x1xf32>
    %29 = vector.broadcast %28 : vector<24x1xf32> to vector<24x24xf32>
    %30 = arith.mulf %25, %29 : vector<24x24xf32>
    %31 = arith.truncf %30 : vector<24x24xf32> to vector<24x24xbf16>
    %cst_14 = arith.constant dense<0.000000e+00> : vector<24x16xf32>
    %32 = tpu.matmul %31, %16, %cst_14 {dimension_numbers = #tpu.dot_dimension_numbers<[1], [0], [0], [1], [0, 0, 1, 1], [], []>} : vector<24x24xbf16>, vector<24x16xbf16>, vector<24x16xf32> -> vector<24x16xf32>
    %c0_15 = arith.constant 0 : index
    %c0_16 = arith.constant 0 : index
    %33 = vector.load %arg17[%c0_15, %c0_16] : memref<48x32xf32, #tpu.memory_space<vmem>>, vector<24x16xf32>
    tpu.vector_store %arg17[%c0_15, %c0_16], %32 {strides = array<i32>} : memref<48x32xf32, #tpu.memory_space<vmem>>, vector<24x16xf32>,
    %34 = vector.extract_strided_slice %12 {offsets = [0, 16], sizes = [24, 16], strides = [1, 1]} : vector<48x96xbf16> to vector<24x16xbf16>
    %35 = vector.extract_strided_slice %12 {offsets = [0, 48], sizes = [24, 16], strides = [1, 1]} : vector<48x96xbf16> to vector<24x16xbf16>
    %36 = vector.extract_strided_slice %12 {offsets = [0, 80], sizes = [24, 16], strides = [1, 1]} : vector<48x96xbf16> to vector<24x16xbf16>
    %cst_17 = arith.constant dense<0.000000e+00> : vector<24x24xf32>
    %37 = tpu.matmul %34, %35, %cst_17 {dimension_numbers = #tpu.dot_dimension_numbers<[1], [1], [0], [0], [0, 0, 1, 0], [], []>} : vector<24x16xbf16>, vector<24x16xbf16>, vector<24x24xf32> -> vector<24x24xf32>
    %cst_18 = arith.constant 2.500000e-01 : f32
    %38 = vector.broadcast %cst_18 : f32 to vector<24x24xf32>
    %39 = arith.mulf %37, %38 : vector<24x24xf32>
    %40 = arith.addf %39, %13 : vector<24x24xf32>
    %cst_19 = arith.constant dense<0xFF800000> : vector<24xf32>
    %41 = vector.multi_reduction <maximumf>, %40, %cst_19 [1] : vector<24x24xf32> to vector<24xf32>
    %42 = vector.shape_cast %41 : vector<24xf32> to vector<24x1xf32>
    %43 = vector.broadcast %42 : vector<24x1xf32> to vector<24x24xf32>
    %44 = arith.subf %40, %43 : vector<24x24xf32>
    %45 = math.exp %44 : vector<24x24xf32>
    %cst_20 = arith.constant dense<0.000000e+00> : vector<24xf32>
    %46 = vector.multi_reduction <add>, %45, %cst_20 [1] : vector<24x24xf32> to vector<24xf32>
    %47 = vector.shape_cast %46 : vector<24xf32> to vector<24x1xf32>
    %48 = tpu.reciprocal %47 {approx = true} : vector<24x1xf32> -> vector<24x1xf32>
    %49 = vector.broadcast %48 : vector<24x1xf32> to vector<24x24xf32>
    %50 = arith.mulf %45, %49 : vector<24x24xf32>
    %51 = arith.truncf %50 : vector<24x24xf32> to vector<24x24xbf16>
    %cst_21 = arith.constant dense<0.000000e+00> : vector<24x16xf32>
    %52 = tpu.matmul %51, %36, %cst_21 {dimension_numbers = #tpu.dot_dimension_numbers<[1], [0], [0], [1], [0, 0, 1, 1], [], []>} : vector<24x24xbf16>, vector<24x16xbf16>, vector<24x16xf32> -> vector<24x16xf32>
    %c0_22 = arith.constant 0 : index
    %c16 = arith.constant 16 : index
    %53 = vector.load %arg17[%c0_22, %c16] : memref<48x32xf32, #tpu.memory_space<vmem>>, vector<24x16xf32>
    tpu.vector_store %arg17[%c0_22, %c16], %52 {strides = array<i32>} : memref<48x32xf32, #tpu.memory_space<vmem>>, vector<24x16xf32>,
    %54 = vector.extract_strided_slice %12 {offsets = [24, 0], sizes = [24, 16], strides = [1, 1]} : vector<48x96xbf16> to vector<24x16xbf16>
    %55 = vector.extract_strided_slice %12 {offsets = [24, 32], sizes = [24, 16], strides = [1, 1]} : vector<48x96xbf16> to vector<24x16xbf16>
    %56 = vector.extract_strided_slice %12 {offsets = [24, 64], sizes = [24, 16], strides = [1, 1]} : vector<48x96xbf16> to vector<24x16xbf16>
    %cst_23 = arith.constant dense<0.000000e+00> : vector<24x24xf32>
    %57 = tpu.matmul %54, %55, %cst_23 {dimension_numbers = #tpu.dot_dimension_numbers<[1], [1], [0], [0], [0, 0, 1, 0], [], []>} : vector<24x16xbf16>, vector<24x16xbf16>, vector<24x24xf32> -> vector<24x24xf32>
    %cst_24 = arith.constant 2.500000e-01 : f32
    %58 = vector.broadcast %cst_24 : f32 to vector<24x24xf32>
    %59 = arith.mulf %57, %58 : vector<24x24xf32>
    %60 = arith.addf %59, %13 : vector<24x24xf32>
    %cst_25 = arith.constant dense<0xFF800000> : vector<24xf32>
    %61 = vector.multi_reduction <maximumf>, %60, %cst_25 [1] : vector<24x24xf32> to vector<24xf32>
    %62 = vector.shape_cast %61 : vector<24xf32> to vector<24x1xf32>
    %63 = vector.broadcast %62 : vector<24x1xf32> to vector<24x24xf32>
    %64 = arith.subf %60, %63 : vector<24x24xf32>
    %65 = math.exp %64 : vector<24x24xf32>
    %cst_26 = arith.constant dense<0.000000e+00> : vector<24xf32>
    %66 = vector.multi_reduction <add>, %65, %cst_26 [1] : vector<24x24xf32> to vector<24xf32>
    %67 = vector.shape_cast %66 : vector<24xf32> to vector<24x1xf32>
    %68 = tpu.reciprocal %67 {approx = true} : vector<24x1xf32> -> vector<24x1xf32>
    %69 = vector.broadcast %68 : vector<24x1xf32> to vector<24x24xf32>
    %70 = arith.mulf %65, %69 : vector<24x24xf32>
    %71 = arith.truncf %70 : vector<24x24xf32> to vector<24x24xbf16>
    %cst_27 = arith.constant dense<0.000000e+00> : vector<24x16xf32>
    %72 = tpu.matmul %71, %56, %cst_27 {dimension_numbers = #tpu.dot_dimension_numbers<[1], [0], [0], [1], [0, 0, 1, 1], [], []>} : vector<24x24xbf16>, vector<24x16xbf16>, vector<24x16xf32> -> vector<24x16xf32>
    %c24 = arith.constant 24 : index
    %c0_28 = arith.constant 0 : index
    %73 = vector.load %arg17[%c24, %c0_28] : memref<48x32xf32, #tpu.memory_space<vmem>>, vector<24x16xf32>
    tpu.vector_store %arg17[%c24, %c0_28], %72 {strides = array<i32>} : memref<48x32xf32, #tpu.memory_space<vmem>>, vector<24x16xf32>,
    %74 = vector.extract_strided_slice %12 {offsets = [24, 16], sizes = [24, 16], strides = [1, 1]} : vector<48x96xbf16> to vector<24x16xbf16>
    %75 = vector.extract_strided_slice %12 {offsets = [24, 48], sizes = [24, 16], strides = [1, 1]} : vector<48x96xbf16> to vector<24x16xbf16>
    %76 = vector.extract_strided_slice %12 {offsets = [24, 80], sizes = [24, 16], strides = [1, 1]} : vector<48x96xbf16> to vector<24x16xbf16>
    %cst_29 = arith.constant dense<0.000000e+00> : vector<24x24xf32>
    %77 = tpu.matmul %74, %75, %cst_29 {dimension_numbers = #tpu.dot_dimension_numbers<[1], [1], [0], [0], [0, 0, 1, 0], [], []>} : vector<24x16xbf16>, vector<24x16xbf16>, vector<24x24xf32> -> vector<24x24xf32>
    %cst_30 = arith.constant 2.500000e-01 : f32
    %78 = vector.broadcast %cst_30 : f32 to vector<24x24xf32>
    %79 = arith.mulf %77, %78 : vector<24x24xf32>
    %80 = arith.addf %79, %13 : vector<24x24xf32>
    %cst_31 = arith.constant dense<0xFF800000> : vector<24xf32>
    %81 = vector.multi_reduction <maximumf>, %80, %cst_31 [1] : vector<24x24xf32> to vector<24xf32>
    %82 = vector.shape_cast %81 : vector<24xf32> to vector<24x1xf32>
    %83 = vector.broadcast %82 : vector<24x1xf32> to vector<24x24xf32>
    %84 = arith.subf %80, %83 : vector<24x24xf32>
    %85 = math.exp %84 : vector<24x24xf32>
    %cst_32 = arith.constant dense<0.000000e+00> : vector<24xf32>
    %86 = vector.multi_reduction <add>, %85, %cst_32 [1] : vector<24x24xf32> to vector<24xf32>
    %87 = vector.shape_cast %86 : vector<24xf32> to vector<24x1xf32>
    %88 = tpu.reciprocal %87 {approx = true} : vector<24x1xf32> -> vector<24x1xf32>
    %89 = vector.broadcast %88 : vector<24x1xf32> to vector<24x24xf32>
    %90 = arith.mulf %85, %89 : vector<24x24xf32>
    %91 = arith.truncf %90 : vector<24x24xf32> to vector<24x24xbf16>
    %cst_33 = arith.constant dense<0.000000e+00> : vector<24x16xf32>
    %92 = tpu.matmul %91, %76, %cst_33 {dimension_numbers = #tpu.dot_dimension_numbers<[1], [0], [0], [1], [0, 0, 1, 1], [], []>} : vector<24x24xbf16>, vector<24x16xbf16>, vector<24x16xf32> -> vector<24x16xf32>
    %c24_34 = arith.constant 24 : index
    %c16_35 = arith.constant 16 : index
    %93 = vector.load %arg17[%c24_34, %c16_35] : memref<48x32xf32, #tpu.memory_space<vmem>>, vector<24x16xf32>
    tpu.vector_store %arg17[%c24_34, %c16_35], %92 {strides = array<i32>} : memref<48x32xf32, #tpu.memory_space<vmem>>, vector<24x16xf32>,
    %c0_36 = arith.constant 0 : index
    %c0_37 = arith.constant 0 : index
    %94 = vector.load %arg17[%c0_36, %c0_37] : memref<48x32xf32, #tpu.memory_space<vmem>>, vector<48x32xf32>
    %95 = arith.truncf %94 : vector<48x32xf32> to vector<48x32xbf16>
    %c0_38 = arith.constant 0 : index
    %c0_39 = arith.constant 0 : index
    %c0_40 = arith.constant 0 : index
    %96 = vector.load %arg5[%c0_38, %c0_39, %c0_40] : memref<1x32x32xbf16, #tpu.memory_space<vmem>>, vector<1x32x32xbf16>
    %97 = vector.shape_cast %96 : vector<1x32x32xbf16> to vector<32x32xbf16>
    %cst_41 = arith.constant dense<0.000000e+00> : vector<48x32xf32>
    %98 = tpu.matmul %95, %97, %cst_41 {dimension_numbers = #tpu.dot_dimension_numbers<[1], [0], [0], [1], [0, 0, 1, 1], [], []>} : vector<48x32xbf16>, vector<32x32xbf16>, vector<48x32xf32> -> vector<48x32xf32>
    %c0_42 = arith.constant 0 : index
    %c0_43 = arith.constant 0 : index
    %c0_44 = arith.constant 0 : index
    %99 = vector.load %arg6[%c0_42, %c0_43, %c0_44] : memref<1x1x32xf32, #tpu.memory_space<vmem>>, vector<1x1x32xf32>
    %100 = vector.shape_cast %99 : vector<1x1x32xf32> to vector<1x32xf32>
    %101 = vector.broadcast %100 : vector<1x32xf32> to vector<48x32xf32>
    %102 = arith.addf %98, %101 : vector<48x32xf32>
    %103 = arith.addf %3, %102 : vector<48x32xf32>
    %c0_45 = arith.constant 0 : index
    %c0_46 = arith.constant 0 : index
    %c0_47 = arith.constant 0 : index
    %104 = vector.load %arg7[%c0_45, %c0_46, %c0_47] : memref<1x1x32xf32, #tpu.memory_space<vmem>>, vector<1x1x32xf32>
    %105 = vector.shape_cast %104 : vector<1x1x32xf32> to vector<1x32xf32>
    %c0_48 = arith.constant 0 : index
    %c0_49 = arith.constant 0 : index
    %c0_50 = arith.constant 0 : index
    %106 = vector.load %arg8[%c0_48, %c0_49, %c0_50] : memref<1x1x32xf32, #tpu.memory_space<vmem>>, vector<1x1x32xf32>
    %107 = vector.shape_cast %106 : vector<1x1x32xf32> to vector<1x32xf32>
    %cst_51 = arith.constant dense<0.000000e+00> : vector<48xf32>
    %108 = vector.multi_reduction <add>, %103, %cst_51 [1] : vector<48x32xf32> to vector<48xf32>
    %109 = vector.shape_cast %108 : vector<48xf32> to vector<48x1xf32>
    %cst_52 = arith.constant 3.200000e+01 : f32
    %110 = vector.broadcast %cst_52 : f32 to vector<48x1xf32>
    %111 = arith.divf %109, %110 : vector<48x1xf32>
    %112 = vector.broadcast %111 : vector<48x1xf32> to vector<48x32xf32>
    %113 = arith.subf %103, %112 : vector<48x32xf32>
    %114 = arith.mulf %113, %113 : vector<48x32xf32>
    %cst_53 = arith.constant dense<0.000000e+00> : vector<48xf32>
    %115 = vector.multi_reduction <add>, %114, %cst_53 [1] : vector<48x32xf32> to vector<48xf32>
    %116 = vector.shape_cast %115 : vector<48xf32> to vector<48x1xf32>
    %cst_54 = arith.constant 3.200000e+01 : f32
    %117 = vector.broadcast %cst_54 : f32 to vector<48x1xf32>
    %118 = arith.divf %116, %117 : vector<48x1xf32>
    %cst_55 = arith.constant 9.99999974E-6 : f32
    %119 = vector.broadcast %cst_55 : f32 to vector<48x1xf32>
    %120 = arith.addf %118, %119 : vector<48x1xf32>
    %121 = math.rsqrt %120 : vector<48x1xf32>
    %122 = vector.broadcast %121 : vector<48x1xf32> to vector<48x32xf32>
    %123 = arith.mulf %113, %122 : vector<48x32xf32>
    %124 = vector.broadcast %105 : vector<1x32xf32> to vector<48x32xf32>
    %125 = arith.mulf %123, %124 : vector<48x32xf32>
    %126 = vector.broadcast %107 : vector<1x32xf32> to vector<48x32xf32>
    %127 = arith.addf %125, %126 : vector<48x32xf32>
    %128 = arith.truncf %127 : vector<48x32xf32> to vector<48x32xbf16>
    %c0_56 = arith.constant 0 : index
    %c0_57 = arith.constant 0 : index
    %c0_58 = arith.constant 0 : index
    %129 = vector.load %arg9[%c0_56, %c0_57, %c0_58] : memref<1x32x128xbf16, #tpu.memory_space<vmem>>, vector<1x32x128xbf16>
    %130 = vector.shape_cast %129 : vector<1x32x128xbf16> to vector<32x128xbf16>
    %cst_59 = arith.constant dense<0.000000e+00> : vector<48x128xf32>
    %131 = tpu.matmul %128, %130, %cst_59 {dimension_numbers = #tpu.dot_dimension_numbers<[1], [0], [0], [1], [0, 0, 1, 1], [], []>} : vector<48x32xbf16>, vector<32x128xbf16>, vector<48x128xf32> -> vector<48x128xf32>
    %c0_60 = arith.constant 0 : index
    %c0_61 = arith.constant 0 : index
    %c0_62 = arith.constant 0 : index
    %132 = vector.load %arg10[%c0_60, %c0_61, %c0_62] : memref<1x1x128xf32, #tpu.memory_space<vmem>>, vector<1x1x128xf32>
    %133 = vector.shape_cast %132 : vector<1x1x128xf32> to vector<1x128xf32>
    %134 = vector.broadcast %133 : vector<1x128xf32> to vector<48x128xf32>
    %135 = arith.addf %131, %134 : vector<48x128xf32>
    %cst_63 = arith.constant 5.000000e-01 : f32
    %136 = vector.broadcast %cst_63 : f32 to vector<48x128xf32>
    %137 = arith.mulf %136, %135 : vector<48x128xf32>
    %cst_64 = arith.constant 0.707106769 : f32
    %138 = vector.broadcast %cst_64 : f32 to vector<48x128xf32>
    %139 = arith.mulf %135, %138 : vector<48x128xf32>
    %cst_65 = arith.constant 0.000000e+00 : f32
    %140 = vector.broadcast %cst_65 : f32 to vector<48x128xf32>
    %141 = arith.cmpf oge, %139, %140 : vector<48x128xf32>
    %cst_66 = arith.constant 1.000000e+00 : f32
    %cst_67 = arith.constant -1.000000e+00 : f32
    %142 = vector.broadcast %cst_66 : f32 to vector<48x128xf32>
    %143 = vector.broadcast %cst_67 : f32 to vector<48x128xf32>
    %144 = arith.select %141, %142, %143 : vector<48x128xi1>, vector<48x128xf32>
    %145 = math.absf %139 : vector<48x128xf32>
    %cst_68 = arith.constant 0.327591091 : f32
    %146 = vector.broadcast %cst_68 : f32 to vector<48x128xf32>
    %147 = arith.mulf %146, %145 : vector<48x128xf32>
    %cst_69 = arith.constant 1.000000e+00 : f32
    %148 = vector.broadcast %cst_69 : f32 to vector<48x128xf32>
    %149 = arith.addf %148, %147 : vector<48x128xf32>
    %150 = tpu.reciprocal %149 {approx = true} : vector<48x128xf32> -> vector<48x128xf32>
    %cst_70 = arith.constant 1.06140542 : f32
    %151 = vector.broadcast %cst_70 : f32 to vector<48x128xf32>
    %152 = arith.mulf %151, %150 : vector<48x128xf32>
    %cst_71 = arith.constant -1.45315206 : f32
    %153 = vector.broadcast %cst_71 : f32 to vector<48x128xf32>
    %154 = arith.addf %152, %153 : vector<48x128xf32>
    %155 = arith.mulf %154, %150 : vector<48x128xf32>
    %cst_72 = arith.constant 1.42141378 : f32
    %156 = vector.broadcast %cst_72 : f32 to vector<48x128xf32>
    %157 = arith.addf %155, %156 : vector<48x128xf32>
    %158 = arith.mulf %157, %150 : vector<48x128xf32>
    %cst_73 = arith.constant -0.284496725 : f32
    %159 = vector.broadcast %cst_73 : f32 to vector<48x128xf32>
    %160 = arith.addf %158, %159 : vector<48x128xf32>
    %161 = arith.mulf %160, %150 : vector<48x128xf32>
    %cst_74 = arith.constant 0.254829586 : f32
    %162 = vector.broadcast %cst_74 : f32 to vector<48x128xf32>
    %163 = arith.addf %161, %162 : vector<48x128xf32>
    %164 = arith.mulf %163, %150 : vector<48x128xf32>
    %cst_75 = arith.constant 0.000000e+00 : f32
    %165 = vector.broadcast %cst_75 : f32 to vector<48x128xf32>
    %166 = arith.subf %165, %145 : vector<48x128xf32>
    %167 = arith.mulf %166, %145 : vector<48x128xf32>
    %168 = math.exp %167 : vector<48x128xf32>
    %169 = arith.mulf %164, %168 : vector<48x128xf32>
    %cst_76 = arith.constant 1.000000e+00 : f32
    %170 = vector.broadcast %cst_76 : f32 to vector<48x128xf32>
    %171 = arith.subf %170, %169 : vector<48x128xf32>
    %172 = arith.mulf %144, %171 : vector<48x128xf32>
    %cst_77 = arith.constant 1.000000e+00 : f32
    %173 = vector.broadcast %cst_77 : f32 to vector<48x128xf32>
    %174 = arith.addf %173, %172 : vector<48x128xf32>
    %175 = arith.mulf %137, %174 : vector<48x128xf32>
    %176 = arith.truncf %175 : vector<48x128xf32> to vector<48x128xbf16>
    %c0_78 = arith.constant 0 : index
    %c0_79 = arith.constant 0 : index
    %c0_80 = arith.constant 0 : index
    %177 = vector.load %arg11[%c0_78, %c0_79, %c0_80] : memref<1x128x32xbf16, #tpu.memory_space<vmem>>, vector<1x128x32xbf16>
    %178 = vector.shape_cast %177 : vector<1x128x32xbf16> to vector<128x32xbf16>
    %cst_81 = arith.constant dense<0.000000e+00> : vector<48x32xf32>
    %179 = tpu.matmul %176, %178, %cst_81 {dimension_numbers = #tpu.dot_dimension_numbers<[1], [0], [0], [1], [0, 0, 1, 1], [], []>} : vector<48x128xbf16>, vector<128x32xbf16>, vector<48x32xf32> -> vector<48x32xf32>
    %c0_82 = arith.constant 0 : index
    %c0_83 = arith.constant 0 : index
    %c0_84 = arith.constant 0 : index
    %180 = vector.load %arg12[%c0_82, %c0_83, %c0_84] : memref<1x1x32xf32, #tpu.memory_space<vmem>>, vector<1x1x32xf32>
    %181 = vector.shape_cast %180 : vector<1x1x32xf32> to vector<1x32xf32>
    %182 = vector.broadcast %181 : vector<1x32xf32> to vector<48x32xf32>
    %183 = arith.addf %179, %182 : vector<48x32xf32>
    %184 = arith.addf %127, %183 : vector<48x32xf32>
    %c0_85 = arith.constant 0 : index
    %c0_86 = arith.constant 0 : index
    %c0_87 = arith.constant 0 : index
    %185 = vector.load %arg13[%c0_85, %c0_86, %c0_87] : memref<1x1x32xf32, #tpu.memory_space<vmem>>, vector<1x1x32xf32>
    %186 = vector.shape_cast %185 : vector<1x1x32xf32> to vector<1x32xf32>
    %c0_88 = arith.constant 0 : index
    %c0_89 = arith.constant 0 : index
    %c0_90 = arith.constant 0 : index
    %187 = vector.load %arg14[%c0_88, %c0_89, %c0_90] : memref<1x1x32xf32, #tpu.memory_space<vmem>>, vector<1x1x32xf32>
    %188 = vector.shape_cast %187 : vector<1x1x32xf32> to vector<1x32xf32>
    %cst_91 = arith.constant dense<0.000000e+00> : vector<48xf32>
    %189 = vector.multi_reduction <add>, %184, %cst_91 [1] : vector<48x32xf32> to vector<48xf32>
    %190 = vector.shape_cast %189 : vector<48xf32> to vector<48x1xf32>
    %cst_92 = arith.constant 3.200000e+01 : f32
    %191 = vector.broadcast %cst_92 : f32 to vector<48x1xf32>
    %192 = arith.divf %190, %191 : vector<48x1xf32>
    %193 = vector.broadcast %192 : vector<48x1xf32> to vector<48x32xf32>
    %194 = arith.subf %184, %193 : vector<48x32xf32>
    %195 = arith.mulf %194, %194 : vector<48x32xf32>
    %cst_93 = arith.constant dense<0.000000e+00> : vector<48xf32>
    %196 = vector.multi_reduction <add>, %195, %cst_93 [1] : vector<48x32xf32> to vector<48xf32>
    %197 = vector.shape_cast %196 : vector<48xf32> to vector<48x1xf32>
    %cst_94 = arith.constant 3.200000e+01 : f32
    %198 = vector.broadcast %cst_94 : f32 to vector<48x1xf32>
    %199 = arith.divf %197, %198 : vector<48x1xf32>
    %cst_95 = arith.constant 9.99999974E-6 : f32
    %200 = vector.broadcast %cst_95 : f32 to vector<48x1xf32>
    %201 = arith.addf %199, %200 : vector<48x1xf32>
    %202 = math.rsqrt %201 : vector<48x1xf32>
    %203 = vector.broadcast %202 : vector<48x1xf32> to vector<48x32xf32>
    %204 = arith.mulf %194, %203 : vector<48x32xf32>
    %205 = vector.broadcast %186 : vector<1x32xf32> to vector<48x32xf32>
    %206 = arith.mulf %204, %205 : vector<48x32xf32>
    %207 = vector.broadcast %188 : vector<1x32xf32> to vector<48x32xf32>
    %208 = arith.addf %206, %207 : vector<48x32xf32>
    %c0_96 = arith.constant 0 : index
    %c0_97 = arith.constant 0 : index
    %209 = vector.load %arg16[%c0_96, %c0_97] : memref<48x32xf32, #tpu.memory_space<vmem>>, vector<48x32xf32>
    tpu.vector_store %arg16[%c0_96, %c0_97], %208 {strides = array<i32>} : memref<48x32xf32, #tpu.memory_space<vmem>>, vector<48x32xf32>,
    %c1_i32 = arith.constant 1 : i32
    %210 = arith.cmpi eq, %arg0, %c1_i32 : i32
    %211 = arith.extui %210 : i1 to i32
    %c0_i32_98 = arith.constant 0 : i32
    %212 = arith.cmpi ne, %211, %c0_i32_98 : i32
    scf.if %212 {
      %c0_99 = arith.constant 0 : index
      %c0_100 = arith.constant 0 : index
      %213 = vector.load %arg15[%c0_99, %c0_100] : memref<48x32xf32, #tpu.memory_space<vmem>>, vector<48x32xf32>
      tpu.vector_store %arg15[%c0_99, %c0_100], %208 {strides = array<i32>} : memref<48x32xf32, #tpu.memory_space<vmem>>, vector<48x32xf32>,
    } else {
    }
    return
  }
  func.func @transform_0(%arg0: i32) -> (i32, i32) {
    %c0_i32 = arith.constant 0 : i32
    %c0_i32_0 = arith.constant 0 : i32
    %c0_i32_1 = arith.constant 0 : i32
    return %c0_i32, %c0_i32_0 : i32, i32
  }
  func.func @transform_1(%arg0: i32) -> (i32, i32) {
    %c0_i32 = arith.constant 0 : i32
    %c0_i32_0 = arith.constant 0 : i32
    %c0_i32_1 = arith.constant 0 : i32
    return %c0_i32, %c0_i32_0 : i32, i32
  }
  func.func @transform_2(%arg0: i32) -> (i32, i32, i32) {
    %c0_i32 = arith.constant 0 : i32
    %c0_i32_0 = arith.constant 0 : i32
    %c0_i32_1 = arith.constant 0 : i32
    return %arg0, %c0_i32, %c0_i32_0 : i32, i32, i32
  }
  func.func @transform_3(%arg0: i32) -> (i32, i32, i32) {
    %c0_i32 = arith.constant 0 : i32
    %c0_i32_0 = arith.constant 0 : i32
    %c0_i32_1 = arith.constant 0 : i32
    return %arg0, %c0_i32, %c0_i32_0 : i32, i32, i32
  }
  func.func @transform_4(%arg0: i32) -> (i32, i32, i32) {
    %c0_i32 = arith.constant 0 : i32
    %c0_i32_0 = arith.constant 0 : i32
    %c0_i32_1 = arith.constant 0 : i32
    return %arg0, %c0_i32, %c0_i32_0 : i32, i32, i32
  }
  func.func @transform_5(%arg0: i32) -> (i32, i32, i32) {
    %c0_i32 = arith.constant 0 : i32
    %c0_i32_0 = arith.constant 0 : i32
    %c0_i32_1 = arith.constant 0 : i32
    return %arg0, %c0_i32, %c0_i32_0 : i32, i32, i32
  }
  func.func @transform_6(%arg0: i32) -> (i32, i32, i32) {
    %c0_i32 = arith.constant 0 : i32
    %c0_i32_0 = arith.constant 0 : i32
    %c0_i32_1 = arith.constant 0 : i32
    return %arg0, %c0_i32, %c0_i32_0 : i32, i32, i32
  }
  func.func @transform_7(%arg0: i32) -> (i32, i32, i32) {
    %c0_i32 = arith.constant 0 : i32
    %c0_i32_0 = arith.constant 0 : i32
    %c0_i32_1 = arith.constant 0 : i32
    return %arg0, %c0_i32, %c0_i32_0 : i32, i32, i32
  }
  func.func @transform_8(%arg0: i32) -> (i32, i32, i32) {
    %c0_i32 = arith.constant 0 : i32
    %c0_i32_0 = arith.constant 0 : i32
    %c0_i32_1 = arith.constant 0 : i32
    return %arg0, %c0_i32, %c0_i32_0 : i32, i32, i32
  }
  func.func @transform_9(%arg0: i32) -> (i32, i32, i32) {
    %c0_i32 = arith.constant 0 : i32
    %c0_i32_0 = arith.constant 0 : i32
    %c0_i32_1 = arith.constant 0 : i32
    return %arg0, %c0_i32, %c0_i32_0 : i32, i32, i32
  }
  func.func @transform_10(%arg0: i32) -> (i32, i32, i32) {
    %c0_i32 = arith.constant 0 : i32
    %c0_i32_0 = arith.constant 0 : i32
    %c0_i32_1 = arith.constant 0 : i32
    return %arg0, %c0_i32, %c0_i32_0 : i32, i32, i32
  }
  func.func @transform_11(%arg0: i32) -> (i32, i32, i32) {
    %c0_i32 = arith.constant 0 : i32
    %c0_i32_0 = arith.constant 0 : i32
    %c0_i32_1 = arith.constant 0 : i32
    return %arg0, %c0_i32, %c0_i32_0 : i32, i32, i32
  }
  func.func @transform_12(%arg0: i32) -> (i32, i32, i32) {
    %c0_i32 = arith.constant 0 : i32
    %c0_i32_0 = arith.constant 0 : i32
    %c0_i32_1 = arith.constant 0 : i32
    return %arg0, %c0_i32, %c0_i32_0 : i32, i32, i32
  }
  func.func @transform_13(%arg0: i32) -> (i32, i32, i32) {
    %c0_i32 = arith.constant 0 : i32
    %c0_i32_0 = arith.constant 0 : i32
    %c0_i32_1 = arith.constant 0 : i32
    return %arg0, %c0_i32, %c0_i32_0 : i32, i32, i32
  }
  func.func @transform_14(%arg0: i32) -> (i32, i32) {
    %c0_i32 = arith.constant 0 : i32
    %c0_i32_0 = arith.constant 0 : i32
    %c0_i32_1 = arith.constant 0 : i32
    return %c0_i32, %c0_i32_0 : i32, i32
  }
}

</mosaic_0001>

<bundles_post_ra>
// kernel: tpu_custom_call.1
= control target key start
LH: loop header
LB: loop body
LE: loop exit
PB: predicated region body
PF: predicated region fallthrough
CT: control target
= control target key end

     0   :  { %s2817_s29 = smov 0   ;;  %s3385_s0 = inlined_call_operand.vmem [shape: f32[48,32], index: 0, kind: input, shape index: {}]   ;;  %s3386_s1 = inlined_call_operand.vmem [shape: f32[24,24], index: 1, kind: input, shape index: {}]   ;;  %s3387_s2 = inlined_call_operand.vmem [shape: bf16[2,32,96], index: 2, kind: input, shape index: {}]   ;;  %s3388_s3 = inlined_call_operand.vmem [shape: f32[2,1,96], index: 3, kind: input, shape index: {}]   ;;  %s3389_s4 = inlined_call_operand.vmem [shape: bf16[2,32,32], index: 4, kind: input, shape index: {}]   ;;  %s3390_s5 = inlined_call_operand.vmem [shape: f32[2,1,32], index: 5, kind: input, shape index: {}]   ;;  %s3391_s6 = inlined_call_operand.vmem [shape: f32[2,1,32], index: 6, kind: input, shape index: {}]   ;;  %s3392_s7 = inlined_call_operand.vmem [shape: f32[2,1,32], index: 7, kind: input, shape index: {}]   ;;  %s3393_s8 = inlined_call_operand.vmem [shape: bf16[2,32,128], index: 8, kind: input, shape index: {}]   ;;  %s3394_s9 = inlined_call_operand.vmem [shape: f32[2,1,128], index: 9, kind: input, shape index: {}]   ;;  %s3395_s10 = inlined_call_operand.vmem [shape: bf16[2,128,32], index: 10, kind: input, shape index: {}]   ;;  %s3396_s11 = inlined_call_operand.vmem [shape: f32[2,1,32], index: 11, kind: input, shape index: {}]   ;;  %s3397_s12 = inlined_call_operand.vmem [shape: f32[2,1,32], index: 12, kind: input, shape index: {}]   ;;  %s3398_s13 = inlined_call_operand.vmem [shape: f32[2,1,32], index: 13, kind: input, shape index: {}]   ;;  %s3399_s14 = inlined_call_operand.vmem [shape: f32[48,32], index: 14, kind: output, shape index: {}]  }
   0x1   :  { %3404 = sst [smem:[#allocation6_spill]] %s3386_s1 }
   0x2   :  { %3405 = sst [smem:[#allocation7_spill]] %s3387_s2 }
   0x3   :  { %3406 = sst [smem:[#allocation8_spill]] %s3389_s4 }
   0x4   :  { %3407 = sst [smem:[#allocation9_spill]] %s3399_s14 }
   0x5 LB: > { %3408 = sst [smem:[#allocation4_spill]] %s2731_s29  ;;  %s2823_s30 = sadd.s32 4294967295, %s2731_s29   ;;  %s2731_s29 = sphi %s2817_s29, %s24_s29  }
   0x6   : > { %p2324_p0 = scmp.ge.s32.totalorder %s2731_s29, 1  ;;  %p501_p1 = scmp.lt.s32.totalorder %s2731_s29, 3 }
   0x8   : > { %p502_p2 = pnand %p2324_p0, %p501_p1 }
   0xa   : > { %505 = sbr.rel (%p502_p2) target bundleno = 3229 (0xc9d), region = 76 }
  0x11   : > { %p581_p3 = scmp.lt.s32.totalorder %s2823_s30, 1  ;;  %s3409_s2 = sld [smem:[#allocation7_spill]] }
  0x12   : > { %s3410_s4 = sld [smem:[#allocation8_spill]]  ;;  %p2333_p4 = scmp.ne.s32.totalorder %s2823_s30, 0 }
  0x13   : > { %s2829_s15 = scalar_select %p581_p3, %s2823_s30, 1 }
  0x14   : > { %629 = sbr.rel (%p2333_p4) target bundleno = 27 (0x1b), region = 80  ;;  %v630_v0 = vld [vmem:[%s3385_s0] sm:$0xff] (!%p2333_p4)  ;;  %vm636_vm0 = vcmask (!%p2333_p4), 261120   ;;  %v631_v1 = vld [vmem:[%s3385_s0 + $0x8] sm:$0xff] (!%p2333_p4)  ;;  %v632_v2 = vld [vmem:[%s3385_s0 + $0x10] sm:$0xff] (!%p2333_p4) }
  0x15   : > { %s2384_s16 = sshll.u32 %s2829_s15, 4  ;;  %s618_s17 = scalar_lea.vmem %s3396_s11, %s2829_s15  ;;  %637 = vst.msk [vmem:[#allocation2] sm:$0xff] (!%p2333_p4), %vm636_vm0, %v630_v0  ;;  %638 = vst.msk [vmem:[#allocation2 + $0x8] sm:$0xff] (!%p2333_p4), %vm636_vm0, %v631_v1  ;;  %v633_v3 = vld [vmem:[%s3385_s0 + $0x18] sm:$0xff] (!%p2333_p4)  ;;  %v634_v4 = vld [vmem:[%s3385_s0 + $0x20] sm:$0xff] (!%p2333_p4) }
  0x16   : > { %s621_s20 = scalar_lea.vmem %s3397_s12, %s2829_s15  ;;  %s624_s1 = scalar_lea.vmem %s3398_s13, %s2829_s15  ;;  %639 = vst.msk [vmem:[#allocation2 + $0x10] sm:$0xff] (!%p2333_p4), %vm636_vm0, %v632_v2  ;;  %v635_v5 = vld [vmem:[%s3385_s0 + $0x28] sm:$0xff] (!%p2333_p4)  ;;  %640 = vst.msk [vmem:[#allocation2 + $0x18] sm:$0xff] (!%p2333_p4), %vm636_vm0, %v633_v3 }
  0x17   : > { %s2839_s22 = scalar_lea.vmem %s3409_s2, %s2384_s16  ;;  %s2861_s2 = scalar_lea.vmem %s3393_s8, %s2384_s16  ;;  %641 = vst.msk [vmem:[#allocation2 + $0x20] sm:$0xff] (!%p2333_p4), %vm636_vm0, %v634_v4  ;;  %642 = vst.msk [vmem:[#allocation2 + $0x28] sm:$0xff] (!%p2333_p4), %vm636_vm0, %v635_v5 }
  0x18   : > { %s2844_s25 = scalar_lea.vmem %s3410_s4, %s2384_s16  ;;  %s610_s4 = scalar_lea.vmem %s3394_s9, %s2829_s15 }
  0x19   : > { %3411 = sst [smem:[#allocation5_spill]] %s2844_s25  ;;  %s2387_s25 = sshll.u32 %s2829_s15, 6 }
  0x1a   : > { %s2871_s28 = scalar_lea.vmem %s3395_s10, %s2387_s25 }
  0x1b PF: > { %v2615_v6 = vld [vmem:[%s2839_s22] sm:$0xff]   ;;  %v2733_v7 = vmov 0.0   ;;  %v2616_v8 = vld [vmem:[%s2839_s22 + $0x8] sm:$0xff]   ;;  %vm2734_vm1 = vmmov 0   ;;  %vm675_vm2 = vcmask 261120   ;;  %s3412_s25 = scalar_lea.vmem %s3388_s3, %s2829_s15  ;;  %vm754_vm3 = vcmask 130048   ;;  %s3415_s29 = scalar_lea.vmem %s3390_s5, %s2829_s15 }
  0x1c   : > { %2446 = vmatprep.subr.bf16.mxu1 %v2733_v7  ;;  %2450 = vmatprep.mubr.msk.bf16.mxu1 %vm2734_vm1, %v2733_v7  ;;  %v2909_v9 = vld [vmem:[#allocation2] sm:$0xff]  ;;  %v2911_v10 = vld [vmem:[#allocation2 + $0x8] sm:$0xff]  ;;  %s2735_s26 = smov 96   ;;  %s2736_s27 = smov 80   ;;  %vm868_vm4 = vcmask 1043456   ;;  %vm821_vm5 = vcmask 195584  }
  0x1d   : > { %2447 = vmatpush3.bf16.msra.mxu1 %v2615_v6  ;;  %v649_v11 = vpack.c.bf16 %v2911_v10, %v2909_v9  ;;  %v2916_v12 = vld [vmem:[#allocation2 + $0x10] sm:$0xff]  ;;  %v2918_v13 = vld [vmem:[#allocation2 + $0x18] sm:$0xff]  ;;  %v2334_v18 = vld [vmem:[%s3412_s25] ss:$0 sm:$0xff]  ;;  %s2737_s14 = smov 112   ;;  %s3413_s18 = sld [smem:[#allocation6_spill]] }
  0x1e   : > { %2448 = vmatprep.subr.bf16.mxu1 %v2733_v7  ;;  %v650_v14 = vpack.c.bf16 %v2918_v13, %v2916_v12  ;;  %v2928_v15 = vld [vmem:[#allocation2 + $0x20] sm:$0xff]  ;;  %v2930_v16 = vld [vmem:[#allocation2 + $0x28] sm:$0xff]  ;;  %s2738_s24 = smov 64   ;;  %s2739_s25 = smov 48   ;;  %vm1106_vm6 = vcmask 261248  }
  0x1f   : > { %v651_v17 = vpack.c.bf16 %v2930_v16, %v2928_v15  ;;  %s3416_s21 = scalar_lea.vmem %s3391_s6, %s2829_s15  ;;  %p2381_p5 = scmp.ne.s32.totalorder %s2823_s30, 1 }
  0x21   : > { %2449 = vmatpush3.bf16.msra.mxu1 %v2616_v8 }
  0x23   : > { %v2988_v59 = vld [vmem:[%s3413_s18] sm:$0xff]  ;;  %v2993_v0 = vld [vmem:[%s3413_s18 + $0x8] sm:$0xff]  ;;  %v2998_v1 = vld [vmem:[%s3413_s18 + $0x10] sm:$0xff] }
  0x24   : > { %2451 = vmatmul.mubr.msk.bf16.vlgmr.msra.gmra.mrb[0].mxu1 %vm675_vm2, %v649_v11 }
  0x25   : > { %2454 = vmatprep.mubr.msk.bf16.mxu1 %vm2734_vm1, %v2733_v7 }
  0x2c   : > { %2455 = vmatmul.mubr.msk.bf16.gmra.mrb[4].mxu1 %vm675_vm2, %v650_v14 }
  0x2d   : > { %2458 = vmatprep.mubr.msk.bf16.mxu1 %vm2734_vm1, %v2733_v7 }
  0x34   : > { %2459 = vmatmul.mubr.msk.bf16.gmra.mrb[8].mxu1 %vm675_vm2, %v651_v17 }
  0xf7   : > { %v719_v19 = vpop.f32.mrb[0].mxu1 }
  0xf8   : > { %v2452_v20 = vpop.f32.mrb[1].mxu1  ;;  %v720_v22 = vadd.f32 %v2334_v18, %v719_v19 }
  0xf9   : > { %v722_v21 = vpop.f32.mrb[2].mxu1 }
  0xfa   : > { %v723_v23 = vadd.f32 %v2334_v18, %v722_v21  ;;  %v2453_v24 = vpop.f32.mrb[3].mxu1 }
  0xfc   : > { %v2940_v25 = vpack.c.bf16 %v723_v23, %v720_v22 }
  0xfe   : > { %750 = vrot.lane.b32.xlu0 %v2940_v25, %s2735_s26  ;;  %2466 = vmatprep.mubr.msk.bf16.mxu1 %vm754_vm3, %v2940_v25 }
  0xff   : > { %v727_v26 = vpop.f32.mrb[4].mxu1 }
 0x100   : > { %v2456_v27 = vpop.f32.mrb[5].mxu1  ;;  %v728_v29 = vadd.f32 %v2334_v18, %v727_v26 }
 0x101   : > { %v730_v28 = vpop.f32.mrb[6].mxu1 }
 0x102   : > { %v731_v30 = vadd.f32 %v2334_v18, %v730_v28  ;;  %927 = vrot.lane.b32.xlu0 %v2940_v25, %s2736_s27  ;;  %v2457_v31 = vpop.f32.mrb[7].mxu1 }
 0x104   : > { %v2947_v32 = vpack.c.bf16 %v731_v30, %v728_v29 }
 0x106   : > { %923 = vrot.lane.b32.xlu0 %v2940_v25, %s2737_s14  ;;  %752 = vrot.lane.b32.xlu1 %v2947_v32, %s2735_s26  ;;  %v1112_v41 = vrot.slane %v2947_v32, 4 }
 0x107   : > { %v735_v33 = vpop.f32.mrb[8].mxu1 }
 0x108   : > { %v736_v34 = vadd.f32 %v2334_v18, %v735_v33  ;;  %v2460_v35 = vpop.f32.mrb[9].mxu1 }
 0x109   : > { %v738_v36 = vpop.f32.mrb[10].mxu1 }
 0x10a   : > { %v739_v37 = vadd.f32 %v2334_v18, %v738_v36  ;;  %925 = vrot.lane.b32.xlu0 %v2947_v32, %s2737_s14  ;;  %929 = vrot.lane.b32.xlu1 %v2947_v32, %s2736_s27  ;;  %v2461_v38 = vpop.f32.mrb[11].mxu1 }
 0x10c   : > { %v744_v39 = vpack.c.bf16 %v739_v37, %v736_v34 }
 0x10e   : > { %v2956_v40 = vrot.slane %v744_v39, 4 }
 0x110   : > { %v2961_v42 = vsel %vm868_vm4, %v1112_v41, %v2956_v40 }
 0x111   : > { %1115 = vrot.lane.b32.xlu1 %v2961_v42, %s2735_s26 }
 0x115   : > { %1117 = vrot.lane.b32.xlu1 %v2956_v40, %s2735_s26  ;;  %s2740_s26 = smov 16  }
 0x170   : > { %v751_v43 = vpop.permute.xlu0 %750 }
 0x171   : > { %v762_v44 = vsel %vm754_vm3, %v751_v43, 0  ;;  %2586 = vmatprep.subr.msk.bf16.mxu1 %vm754_vm3, %v751_v43 }
 0x172   : > { %2463 = vmatpush3.bf16.xpose.msra.mxu1 %v762_v44 }
 0x174   : > { %v928_v45 = vpop.permute.xlu0 %927 }
 0x175   : > { %2589 = vmatprep.subr.msk.bf16.mxu0 %vm754_vm3, %v928_v45  ;;  %v938_v46 = vsel %vm754_vm3, %v928_v45, 0 }
 0x176   : > { %2479 = vmatpush3.bf16.xpose.msra.mxu0 %v938_v46 }
 0x178   : > { %v924_v47 = vpop.permute.xlu0 %923  ;;  %v753_v48 = vpop.permute.xlu1 %752 }
 0x179   : > { %v765_v49 = vsel %vm754_vm3, %v753_v48, 0  ;;  %2587 = vmatprep.subr.msk.bf16.mxu1 %vm754_vm3, %v753_v48  ;;  %2482 = vmatprep.mubr.msk.bf16.mxu0 %vm754_vm3, %v924_v47 }
 0x17a   : > { %2465 = vmatpush3.bf16.xpose.msra.mxu1 %v765_v49 }
 0x17c   : > { %v930_v50 = vpop.permute.xlu1 %929  ;;  %v926_v53 = vpop.permute.xlu0 %925 }
 0x17d   : > { %2590 = vmatprep.subr.msk.bf16.mxu0 %vm754_vm3, %v930_v50  ;;  %v941_v51 = vsel %vm754_vm3, %v930_v50, 0 }
 0x17e   : > { %2481 = vmatpush3.bf16.xpose.msra.mxu0 %v941_v51 }
 0x181   : > { %2467 = vmatmul.mubr.msk.bf16.vlgmr.msra.gmra.mrb[12].mxu1 %vm754_vm3, %v2947_v32 }
 0x183   : > { %v1116_v52 = vpop.permute.xlu1 %1115 }
 0x184   : > { %v1126_v54 = vsel %vm754_vm3, %v1116_v52, 0  ;;  %2592 = vmatprep.subr.msk.bf16.mxu0 %vm754_vm3, %v1116_v52 }
 0x185   : > { %2483 = vmatmul.mubr.msk.bf16.vlgmr.msra.gmra.mrb[0].mxu0 %vm754_vm3, %v926_v53 }
 0x186   : > { %2495 = vmatpush3.bf16.xpose.msra.mxu0 %v1126_v54  ;;  %2498 = vmatprep.mubr.msk.bf16.mxu0 %vm754_vm3, %v2961_v42 }
 0x187   : > { %v1118_v55 = vpop.permute.xlu1 %1117 }
 0x188   : > { %2593 = vmatprep.subr.msk.bf16.mxu0 %vm754_vm3, %v1118_v55  ;;  %v1129_v56 = vsel %vm754_vm3, %v1118_v55, 0 }
 0x18e   : > { %2497 = vmatpush3.bf16.xpose.msra.mxu0 %v1129_v56 }
 0x195   : > { %2499 = vmatmul.mubr.msk.bf16.vlgmr.msra.gmra.mrb[4].mxu0 %vm754_vm3, %v2956_v40 }
 0x254   : > { %v2468_v57 = vpop.f32.mrb[12].mxu1 }
 0x255   : > { %v801_v58 = vpop.f32.mrb[13].mxu1  ;;  %v817_v60 = vmul.f32 0.25, %v2468_v57 }
 0x256   : > { %v815_v61 = vmul.f32 0.25, %v801_v58  ;;  %v2469_v62 = vpop.f32.mrb[14].mxu1 }
 0x257   : > { %v804_v63 = vpop.f32.mrb[15].mxu1  ;;  %v820_v17 = vadd.f32 %v817_v60, %v2998_v1 }
 0x258   : > { %v816_v2 = vmul.f32 0.25, %v804_v63  ;;  %v2484_v3 = vpop.f32.mrb[0].mxu0  ;;  %v818_v4 = vadd.f32 %v815_v61, %v2988_v59 }
 0x259   : > { %v977_v5 = vpop.f32.mrb[1].mxu0  ;;  %v993_v21 = vmul.f32 0.25, %v2484_v3  ;;  %v828_v22 = vsel %vm821_vm5, %v820_v17, -inf }
 0x25a   : > { %v991_v6 = vmul.f32 0.25, %v977_v5  ;;  %v2485_v8 = vpop.f32.mrb[2].mxu0  ;;  %v822_v11 = vsel %vm821_vm5, %v818_v4, -inf  ;;  %v819_v14 = vadd.f32 %v816_v2, %v2993_v0 }
 0x25b   : > { %v980_v18 = vpop.f32.mrb[3].mxu0  ;;  %823 = vmax.xlane.f32.xlu0 %v822_v11  ;;  %v996_v28 = vadd.f32 %v993_v21, %v2998_v1 }
 0x25c   : > { %v992_v19 = vmul.f32 0.25, %v980_v18  ;;  %v825_v20 = vsel %vm821_vm5, %v819_v14, -inf  ;;  %v994_v24 = vadd.f32 %v991_v6, %v2988_v59 }
 0x25d   : > { %826 = vmax.xlane.f32.xlu1 %v825_v20  ;;  %v1003_v29 = vsel %vm821_vm5, %v996_v28, -inf }
 0x25e   : > { %v3007_v23 = vadd.f32 %v992_v19, %v2993_v0  ;;  %v997_v27 = vsel %vm821_vm5, %v994_v24, -inf }
 0x25f   : > { %829 = vmax.xlane.f32.xlu0 %v828_v22 }
 0x260   : > { %v1000_v26 = vsel %vm821_vm5, %v3007_v23, -inf }
 0x261   : > { %1001 = vmax.xlane.f32.xlu1 %v1000_v26 }
 0x263   : > { %998 = vmax.xlane.f32.xlu0 %v997_v27 }
 0x267   : > { %1004 = vmax.xlane.f32.xlu0 %v1003_v29 }
 0x268   : > { %v2500_v30 = vpop.f32.mrb[4].mxu0 }
 0x269   : > { %v1181_v31 = vmul.f32 0.25, %v2500_v30  ;;  %v1165_v33 = vpop.f32.mrb[5].mxu0 }
 0x26a   : > { %v1179_v34 = vmul.f32 0.25, %v1165_v33  ;;  %v2501_v35 = vpop.f32.mrb[6].mxu0 }
 0x26b   : > { %v1168_v36 = vpop.f32.mrb[7].mxu0  ;;  %v1184_v37 = vadd.f32 %v1181_v31, %v2998_v1 }
 0x26c   : > { %v1182_v39 = vadd.f32 %v1179_v34, %v2988_v59  ;;  %v1180_v43 = vmul.f32 0.25, %v1168_v36 }
 0x26d   : > { %v1191_v38 = vsel %vm821_vm5, %v1184_v37, -inf }
 0x26e   : > { %1192 = vmax.xlane.f32.xlu1 %v1191_v38  ;;  %v1185_v41 = vsel %vm821_vm5, %v1182_v39, -inf  ;;  %v3024_v44 = vadd.f32 %v1180_v43, %v2993_v0 }
 0x270   : > { %v1188_v45 = vsel %vm821_vm5, %v3024_v44, -inf }
 0x272   : > { %1186 = vmax.xlane.f32.xlu1 %v1185_v41 }
 0x27d   : > { %857 = vrot.lane.b32.xlu0 %v2940_v25, %s2738_s24 }
 0x283   : > { %859 = vrot.lane.b32.xlu1 %v2947_v32, %s2738_s24 }
 0x29c   : > { %1189 = vmax.xlane.f32.xlu0 %v1188_v45 }
 0x2b2   : > { %1032 = vrot.lane.b32.xlu0 %v2940_v25, %s2739_s25 }
 0x2e8   : > { %v824_v46 = vpop.xlane.xlu0 %823 }
 0x2e9   : > { %v831_v47 = vsub.f32 %v818_v4, %v824_v46 }
 0x2ea   : > { %v827_v53 = vpop.xlane.xlu1 %826 }
 0x2eb   : > { %v834_v50 = vmul.f32 1.442695, %v831_v47  ;;  %v832_v57 = vsub.f32 %v819_v14, %v827_v53 }
 0x2ec   : > { %v830_v48 = vpop.xlane.xlu0 %829 }
 0x2ed   : > { %v833_v49 = vsub.f32 %v820_v17, %v830_v48  ;;  %v836_v63 = vmul.f32 1.442695, %v832_v57 }
 0x2ee   : > { %v1002_v58 = vpop.xlane.xlu1 %1001 }
 0x2ef   : > { %v838_v51 = vmul.f32 1.442695, %v833_v49  ;;  %v1007_v33 = vsub.f32 %v3007_v23, %v1002_v58 }
 0x2f0   : > { %v999_v52 = vpop.xlane.xlu0 %998 }
 0x2f1   : > { %2629 = vpow2.f32 %v838_v51  ;;  %v1006_v54 = vsub.f32 %v994_v24, %v999_v52  ;;  %v1011_v34 = vmul.f32 1.442695, %v1007_v33 }
 0x2f2   : > { %2631 = vpow2.f32 %v834_v50 }
 0x2f3   : > { %v1009_v60 = vmul.f32 1.442695, %v1006_v54 }
 0x2f4   : > { %v1005_v55 = vpop.xlane.xlu0 %1004 }
 0x2f5   : > { %v1008_v56 = vsub.f32 %v996_v28, %v1005_v55 }
 0x2f7   : > { %v1013_v61 = vmul.f32 1.442695, %v1008_v56 }
 0x2f8   : > { %v858_v62 = vpop.permute.xlu0 %857 }
 0x2f9   : > { %2633 = vpow2.f32 %v1013_v61  ;;  %2470 = vmatprep.subr.bf16.mxu1 %v858_v62 }
 0x2fa   : > { %2471 = vmatpush3.bf16.msra.mxu1 %v858_v62  ;;  %2635 = vpow2.f32 %v1009_v60 }
 0x2fb   : > { %v3030_v25 = vpop.eup %2629  ;;  %v1193_v2 = vpop.xlane.xlu1 %1192  ;;  %2637 = vpow2.f32 %v836_v63 }
 0x2fc   : > { %v1196_v3 = vsub.f32 %v1184_v37, %v1193_v2  ;;  %v846_v4 = vsel %vm821_vm5, %v3030_v25, 0.0  ;;  %v3034_v5 = vpop.eup %2631 }
 0x2fd   : > { %847 = vadd.xlane.f32.xlu0 %v846_v4  ;;  %v840_v14 = vsel %vm821_vm5, %v3034_v5, 0.0 }
 0x2fe   : > { %v1201_v6 = vmul.f32 1.442695, %v1196_v3 }
 0x2ff   : > { %v1187_v8 = vpop.xlane.xlu1 %1186 }
 0x300   : > { %v1194_v11 = vsub.f32 %v1182_v39, %v1187_v8  ;;  %2639 = vpow2.f32 %v1201_v6 }
 0x301   : > { %841 = vadd.xlane.f32.xlu0 %v840_v14 }
 0x302   : > { %v1197_v18 = vmul.f32 1.442695, %v1194_v11 }
 0x303   : > { %v3038_v17 = vpop.eup %2633  ;;  %v860_v19 = vpop.permute.xlu1 %859 }
 0x304   : > { %v870_v20 = vsel %vm868_vm4, %v860_v19, 0  ;;  %2588 = vmatprep.subr.msk.bf16.mxu1 %vm868_vm4, %v860_v19  ;;  %v1021_v21 = vsel %vm821_vm5, %v3038_v17, 0.0  ;;  %v3044_v22 = vpop.eup %2635  ;;  %2641 = vpow2.f32 %v1197_v18 }
 0x305   : > { %1022 = vadd.xlane.f32.xlu1 %v1021_v21  ;;  %2473 = vmatpush3.bf16.msra.mxu1 %v870_v20  ;;  %v1015_v24 = vsel %vm821_vm5, %v3044_v22, 0.0  ;;  %v2638_v26 = vpop.eup %2637  ;;  %2643 = vpow2.f32 %v1011_v34 }
 0x306   : > { %v843_v27 = vsel %vm821_vm5, %v2638_v26, 0.0 }
 0x309   : > { %1016 = vadd.xlane.f32.xlu1 %v1015_v24 }
 0x30a   : > { %v3049_v28 = vpop.eup %2639 }
 0x30b   : > { %v1209_v29 = vsel %vm821_vm5, %v3049_v28, 0.0 }
 0x30d   : > { %844 = vadd.xlane.f32.xlu1 %v843_v27 }
 0x30e   : > { %v3053_v30 = vpop.eup %2641 }
 0x30f   : > { %v1203_v31 = vsel %vm821_vm5, %v3053_v30, 0.0  ;;  %v2644_v39 = vpop.eup %2643 }
 0x310   : > { %v1018_v41 = vsel %vm821_vm5, %v2644_v39, 0.0 }
 0x311   : > { %1210 = vadd.xlane.f32.xlu1 %v1209_v29 }
 0x315   : > { %1204 = vadd.xlane.f32.xlu1 %v1203_v31 }
 0x317   : > { %1034 = vrot.lane.b32.xlu0 %v2947_v32, %s2739_s25 }
 0x329   : > { %v1190_v35 = vpop.xlane.xlu0 %1189 }
 0x32a   : > { %v1195_v36 = vsub.f32 %v3024_v44, %v1190_v35 }
 0x32c   : > { %v1199_v37 = vmul.f32 1.442695, %v1195_v36 }
 0x32d   : > { %v1033_v38 = vpop.permute.xlu0 %1032 }
 0x32e   : > { %2645 = vpow2.f32 %v1199_v37  ;;  %2486 = vmatprep.subr.bf16.mxu1 %v1033_v38 }
 0x336   : > { %1019 = vadd.xlane.f32.xlu0 %v1018_v41 }
 0x338   : > { %v2646_v43 = vpop.eup %2645 }
 0x339   : > { %v1206_v45 = vsel %vm821_vm5, %v2646_v43, 0.0 }
 0x33a   : > { %1207 = vadd.xlane.f32.xlu1 %v1206_v45 }
 0x34b   : > { %1222 = vrot.lane.b32.xlu1 %v2956_v40, %s2738_s24 }
 0x34c   : > { %1220 = vrot.lane.b32.xlu0 %v2961_v42, %s2738_s24  ;;  %s3417_s24 = scalar_lea.vmem %s3392_s7, %s2829_s15 }
 0x34f   : > { %1291 = vrot.lane.b32.xlu1 %v2956_v40, %s2736_s27 }
 0x350   : > { %1289 = vrot.lane.b32.xlu0 %v2961_v42, %s2736_s27  ;;  %s3414_s27 = sld [smem:[#allocation5_spill]] }
 0x353   : > { %1287 = vrot.lane.b32.xlu1 %v2956_v40, %s2737_s14 }
 0x354   : > { %1285 = vrot.lane.b32.xlu0 %v2961_v42, %s2737_s14 }
 0x38a   : > { %v848_v32 = vpop.xlane.xlu0 %847 }
 0x38b   : > { %2647 = vrcp.f32 %v848_v32 }
 0x38e   : > { %v842_v44 = vpop.xlane.xlu0 %841 }
 0x38f   : > { %2649 = vrcp.f32 %v842_v44 }
 0x392   : > { %v1023_v23 = vpop.xlane.xlu1 %1022  ;;  %v1035_v56 = vpop.permute.xlu0 %1034 }
 0x393   : > { %v1044_v57 = vsel %vm868_vm4, %v1035_v56, 0 }
 0x395   : > { %v2648_v48 = vpop.eup %2647 }
 0x396   : > { %v1017_v46 = vpop.xlane.xlu1 %1016  ;;  %v854_v51 = vmul.f32 %v2648_v48, %v3030_v25 }
 0x398   : > { %v856_v55 = vpack.c.bf16 %v854_v51, %v854_v51 }
 0x399   : > { %v2650_v49 = vpop.eup %2649 }
 0x39a   : > { %v845_v47 = vpop.xlane.xlu1 %844  ;;  %v852_v52 = vmul.f32 %v2650_v49, %v3034_v5 }
 0x39b   : > { %2651 = vrcp.f32 %v845_v47 }
 0x39c   : > { %2653 = vrcp.f32 %v1023_v23 }
 0x39d   : > { %2655 = vrcp.f32 %v1017_v46 }
 0x39e   : > { %v1211_v58 = vpop.xlane.xlu1 %1210 }
 0x3a2   : > { %v1205_v60 = vpop.xlane.xlu1 %1204 }
 0x3a5   : > { %v2652_v50 = vpop.eup %2651 }
 0x3a6   : > { %v853_v53 = vmul.f32 %v2652_v50, %v2638_v26  ;;  %v2654_v63 = vpop.eup %2653 }
 0x3a7   : > { %v2656_v2 = vpop.eup %2655  ;;  %v1029_v4 = vmul.f32 %v2654_v63, %v3038_v17 }
 0x3a8   : > { %v855_v54 = vpack.c.bf16 %v853_v53, %v852_v52  ;;  %v1027_v5 = vmul.f32 %v2656_v2, %v3044_v22 }
 0x3a9   : > { %v1031_v18 = vpack.c.bf16 %v1029_v4, %v1029_v4 }
 0x3aa   : > { %2474 = vmatprep.mubr.msk.bf16.mxu1 %vm821_vm5, %v855_v54 }
 0x3ab   : > { %2475 = vmatmul.mubr.msk.bf16.vlgmr.msra.gmra.mrb[16].mxu1 %vm821_vm5, %v856_v55 }
 0x3ac   : > { %2487 = vmatpush3.bf16.msra.mxu1 %v1033_v38 }
 0x3ad   : > { %2591 = vmatprep.subr.msk.bf16.mxu1 %vm868_vm4, %v1035_v56 }
 0x3b0   : > { %2489 = vmatpush3.bf16.msra.mxu1 %v1044_v57 }
 0x3c3   : > { %v1020_v61 = vpop.xlane.xlu0 %1019 }
 0x3c4   : > { %2657 = vrcp.f32 %v1020_v61 }
 0x3c5   : > { %2659 = vrcp.f32 %v1205_v60 }
 0x3c7   : > { %v1221_v62 = vpop.permute.xlu0 %1220  ;;  %v1208_v25 = vpop.xlane.xlu1 %1207 }
 0x3c8   : > { %2661 = vrcp.f32 %v1208_v25  ;;  %2502 = vmatprep.subr.bf16.mxu1 %v1221_v62 }
 0x3c9   : > { %2663 = vrcp.f32 %v1211_v58 }
 0x3cb   : > { %v1223_v24 = vpop.permute.xlu1 %1222  ;;  %v1290_v27 = vpop.permute.xlu0 %1289 }
 0x3cc   : > { %v1232_v22 = vsel %vm868_vm4, %v1223_v24, 0  ;;  %v1300_v31 = vsel %vm754_vm3, %v1290_v27, 0 }
 0x3ce   : > { %v2658_v3 = vpop.eup %2657 }
 0x3cf   : > { %v1028_v6 = vmul.f32 %v2658_v3, %v2644_v39  ;;  %v2660_v8 = vpop.eup %2659  ;;  %v1292_v33 = vpop.permute.xlu1 %1291 }
 0x3d0   : > { %v1215_v20 = vmul.f32 %v2660_v8, %v3053_v30  ;;  %v1286_v30 = vpop.permute.xlu0 %1285 }
 0x3d1   : > { %v1030_v11 = vpack.c.bf16 %v1028_v6, %v1027_v5 }
 0x3d2   : > { %v2662_v14 = vpop.eup %2661 }
 0x3d3   : > { %v2664_v19 = vpop.eup %2663  ;;  %2490 = vmatprep.mubr.msk.bf16.mxu1 %vm821_vm5, %v1030_v11  ;;  %v1216_v21 = vmul.f32 %v2662_v14, %v2646_v43  ;;  %v1288_v34 = vpop.permute.xlu1 %1287 }
 0x3d4   : > { %2491 = vmatmul.mubr.msk.bf16.vlgmr.msra.gmra.mrb[20].mxu1 %vm821_vm5, %v1031_v18  ;;  %v1217_v17 = vmul.f32 %v2664_v19, %v3049_v28  ;;  %v1303_v28 = vsel %vm754_vm3, %v1292_v33, 0 }
 0x3d5   : > { %2503 = vmatpush3.bf16.msra.mxu1 %v1221_v62  ;;  %v1218_v26 = vpack.c.bf16 %v1216_v21, %v1215_v20 }
 0x3d6   : > { %2594 = vmatprep.subr.msk.bf16.mxu1 %vm868_vm4, %v1223_v24  ;;  %v1219_v29 = vpack.c.bf16 %v1217_v17, %v1217_v17 }
 0x3d7   : > { %2506 = vmatprep.mubr.msk.bf16.mxu1 %vm821_vm5, %v1218_v26 }
 0x3d9   : > { %2505 = vmatpush3.bf16.msra.mxu1 %v1232_v22 }
 0x3da   : > { %2595 = vmatprep.subr.msk.bf16.mxu1 %vm754_vm3, %v1290_v27 }
 0x3dc   : > { %2507 = vmatmul.mubr.msk.bf16.vlgmr.msra.gmra.mrb[24].mxu1 %vm821_vm5, %v1219_v29 }
 0x3dd   : > { %2514 = vmatprep.mubr.msk.bf16.mxu1 %vm754_vm3, %v1286_v30 }
 0x3e2   : > { %2511 = vmatpush3.bf16.xpose.msra.mxu1 %v1300_v31 }
 0x3e3   : > { %2596 = vmatprep.subr.msk.bf16.mxu1 %vm754_vm3, %v1292_v33 }
 0x3ea   : > { %2513 = vmatpush3.bf16.xpose.msra.mxu1 %v1303_v28 }
 0x3eb   : > { %2542 = vmatprep.subr.bf16.mxu1 %v2733_v7 }
 0x3f1   : > { %2515 = vmatmul.mubr.msk.bf16.vlgmr.msra.gmra.mrb[28].mxu1 %vm754_vm3, %v1288_v34  ;;  %v2617_v34 = vld [vmem:[%s3414_s27] sm:$0xff]  }
 0x3f2   : > { %2546 = vmatprep.mubr.msk.bf16.mxu1 %vm2734_vm1, %v2733_v7 }
 0x47e   : > { %v2476_v35 = vpop.f32.mrb[16].mxu1 }
 0x47f   : > { %922 = vst.msk [vmem:[#allocation3 + $0x10] sm:$0xff] %vm754_vm3, %v2476_v35  ;;  %v906_v36 = vpop.f32.mrb[17].mxu1 }
 0x480   : > { %920 = vst.msk [vmem:[#allocation3] sm:$0xff] %vm754_vm3, %v906_v36  ;;  %v2477_v37 = vpop.f32.mrb[18].mxu1  ;;  %v2618_v36 = vld [vmem:[%s3414_s27 + $0x8] sm:$0xff]  }
 0x481   : > { %v909_v38 = vpop.f32.mrb[19].mxu1 }
 0x482   : > { %921 = vst.msk [vmem:[#allocation3 + $0x8] sm:$0xff] %vm754_vm3, %v909_v38 }
 0x4a7   : > { %v2492_v39 = vpop.f32.mrb[20].mxu1 }
 0x4a8   : > { %v1080_v41 = vpop.f32.mrb[21].mxu1 }
 0x4a9   : > { %v2493_v43 = vpop.f32.mrb[22].mxu1 }
 0x4aa   : > { %v1083_v45 = vpop.f32.mrb[23].mxu1 }
 0x4af   : > { %v2508_v32 = vpop.f32.mrb[24].mxu1 }
 0x4b0   : > { %1284 = vst.msk [vmem:[#allocation3 + $0x28] sm:$0xff] %vm754_vm3, %v2508_v32  ;;  %v1268_v23 = vpop.f32.mrb[25].mxu1 }
 0x4b1   : > { %1282 = vst.msk [vmem:[#allocation3 + $0x18] sm:$0xff] %vm754_vm3, %v1268_v23  ;;  %v2509_v44 = vpop.f32.mrb[26].mxu1 }
 0x4b2   : > { %v1271_v46 = vpop.f32.mrb[27].mxu1 }
 0x4b3   : > { %1283 = vst.msk [vmem:[#allocation3 + $0x20] sm:$0xff] %vm754_vm3, %v1271_v46 }
 0x4c4   : > { %v2516_v47 = vpop.f32.mrb[28].mxu1 }
 0x4c5   : > { %v1339_v48 = vpop.f32.mrb[29].mxu1  ;;  %v1355_v49 = vmul.f32 0.25, %v2516_v47 }
 0x4c6   : > { %v1353_v50 = vmul.f32 0.25, %v1339_v48  ;;  %v2517_v51 = vpop.f32.mrb[30].mxu1  ;;  %v2356_v48 = vld [vmem:[%s3415_s29] ss:$0 sm:$0xff] }
 0x4c7   : > { %v1342_v52 = vpop.f32.mrb[31].mxu1  ;;  %v1358_v57 = vadd.f32 %v1355_v49, %v2998_v1 }
 0x4c8   : > { %v1354_v53 = vmul.f32 0.25, %v1342_v52  ;;  %v1356_v54 = vadd.f32 %v1353_v50, %v2988_v59 }
 0x4c9   : > { %v1365_v60 = vsel %vm821_vm5, %v1358_v57, -inf }
 0x4ca   : > { %v1359_v55 = vsel %vm821_vm5, %v1356_v54, -inf  ;;  %v1357_v56 = vadd.f32 %v1354_v53, %v2993_v0 }
 0x4cb   : > { %1360 = vmax.xlane.f32.xlu0 %v1359_v55 }
 0x4cc   : > { %v1362_v58 = vsel %vm821_vm5, %v1357_v56, -inf }
 0x4cd   : > { %1363 = vmax.xlane.f32.xlu1 %v1362_v58 }
 0x4cf   : > { %1366 = vmax.xlane.f32.xlu0 %v1365_v60 }
 0x558   : > { %v1361_v61 = vpop.xlane.xlu0 %1360 }
 0x559   : > { %v1368_v25 = vsub.f32 %v1356_v54, %v1361_v61 }
 0x55a   : > { %v1364_v62 = vpop.xlane.xlu1 %1363 }
 0x55b   : > { %v1369_v63 = vsub.f32 %v1357_v56, %v1364_v62  ;;  %v1371_v4 = vmul.f32 1.442695, %v1368_v25 }
 0x55c   : > { %v1367_v2 = vpop.xlane.xlu0 %1366 }
 0x55d   : > { %v1373_v3 = vmul.f32 1.442695, %v1369_v63  ;;  %v1370_v59 = vsub.f32 %v1358_v57, %v1367_v2 }
 0x55f   : > { %2665 = vpow2.f32 %v1373_v3  ;;  %v1375_v5 = vmul.f32 1.442695, %v1370_v59 }
 0x561   : > { %2667 = vpow2.f32 %v1375_v5 }
 0x562   : > { %2669 = vpow2.f32 %v1371_v4 }
 0x569   : > { %v2666_v0 = vpop.eup %2665 }
 0x56a   : > { %v1380_v1 = vsel %vm821_vm5, %v2666_v0, 0.0 }
 0x56b   : > { %v2668_v6 = vpop.eup %2667  ;;  %1381 = vadd.xlane.f32.xlu1 %v1380_v1 }
 0x56c   : > { %v1383_v8 = vsel %vm821_vm5, %v2668_v6, 0.0  ;;  %v2670_v11 = vpop.eup %2669 }
 0x56d   : > { %1384 = vadd.xlane.f32.xlu0 %v1383_v8  ;;  %v1377_v14 = vsel %vm821_vm5, %v2670_v11, 0.0 }
 0x571   : > { %1378 = vadd.xlane.f32.xlu0 %v1377_v14 }
 0x57c   : > { %1394 = vrot.lane.b32.xlu1 %v2961_v42, %s2739_s25 }
 0x580   : > { %1097 = vrot.lane.b32.xlu1 %v1080_v41, %s2740_s26 }
 0x584   : > { %1099 = vrot.lane.b32.xlu1 %v1083_v45, %s2740_s26 }
 0x587   : > { %1396 = vrot.lane.b32.xlu0 %v2956_v40, %s2739_s25 }
 0x58b   : > { %1101 = vrot.lane.b32.xlu0 %v2492_v39, %s2740_s26 }
 0x5f8   : > { %v1382_v18 = vpop.xlane.xlu1 %1381 }
 0x5fa   : > { %v1385_v19 = vpop.xlane.xlu0 %1384 }
 0x5fb   : > { %2671 = vrcp.f32 %v1385_v19 }
 0x5fc   : > { %v1395_v20 = vpop.permute.xlu1 %1394  ;;  %2673 = vrcp.f32 %v1382_v18 }
 0x5fd   : > { %2518 = vmatprep.subr.bf16.mxu0 %v1395_v20 }
 0x5fe   : > { %v1379_v21 = vpop.xlane.xlu0 %1378  ;;  %2519 = vmatpush3.bf16.msra.mxu0 %v1395_v20 }
 0x5ff   : > { %2675 = vrcp.f32 %v1379_v21 }
 0x600   : > { %v1098_v42 = vpop.permute.xlu1 %1097 }
 0x601   : > { %1107 = vst.msk [vmem:[#allocation3] sm:$0xff] %vm1106_vm6, %v1098_v42 }
 0x602   : > { %v1397_v24 = vpop.permute.xlu0 %1396 }
 0x603   : > { %v1406_v26 = vsel %vm868_vm4, %v1397_v24, 0  ;;  %2597 = vmatprep.subr.msk.bf16.mxu0 %vm868_vm4, %v1397_v24 }
 0x604   : > { %2521 = vmatpush3.bf16.msra.mxu0 %v1406_v26  ;;  %v1100_v40 = vpop.permute.xlu1 %1099 }
 0x605   : > { %1108 = vst.msk [vmem:[#allocation3 + $0x8] sm:$0xff] %vm1106_vm6, %v1100_v40  ;;  %2526 = vmatprep.subr.bf16.mxu0 %v2733_v7  ;;  %v2672_v17 = vpop.eup %2671 }
 0x606   : > { %v1102_v27 = vpop.permute.xlu0 %1101  ;;  %v2674_v22 = vpop.eup %2673  ;;  %v1391_v30 = vmul.f32 %v2672_v17, %v2668_v6 }
 0x607   : > { %1109 = vst.msk [vmem:[#allocation3 + $0x10] sm:$0xff] %vm1106_vm6, %v1102_v27  ;;  %v1390_v33 = vmul.f32 %v2674_v22, %v2666_v0 }
 0x608   : > { %v1393_v35 = vpack.c.bf16 %v1391_v30, %v1391_v30  ;;  %v1471_v38 = vld [vmem:[#allocation3] sm:$0xff] }
 0x609   : > { %v2676_v29 = vpop.eup %2675 }
 0x60a   : > { %v1389_v31 = vmul.f32 %v2676_v29, %v2670_v11 }
 0x60c   : > { %v1392_v28 = vpack.c.bf16 %v1390_v33, %v1389_v31  ;;  %v1472_v37 = vld [vmem:[#allocation3 + $0x8] sm:$0xff] }
 0x60d   : > { %v1477_v39 = vpack.c.bf16 %v1472_v37, %v1471_v38 }
 0x60e   : > { %2522 = vmatprep.mubr.msk.bf16.mxu0 %vm821_vm5, %v1392_v28  ;;  %v1473_v58 = vld [vmem:[#allocation3 + $0x10] sm:$0xff] }
 0x60f   : > { %2523 = vmatmul.mubr.msk.bf16.vlgmr.msra.gmra.mrb[8].mxu0 %vm821_vm5, %v1393_v35  ;;  %v2619_v28 = vld [vmem:[%s2861_s2] sm:$0xff]  }
 0x610   : > { %2527 = vmatpush3.bf16.msra.mxu0 %v2617_v34  ;;  %2530 = vmatprep.mubr.msk.bf16.mxu0 %vm2734_vm1, %v2733_v7 }
 0x611   : > { %2528 = vmatprep.subr.bf16.mxu0 %v2733_v7  ;;  %2543 = vmatpush3.bf16.msra.mxu1 %v2619_v28 }
 0x612   : > { %2544 = vmatprep.subr.bf16.mxu1 %v2733_v7 }
 0x614   : > { %2529 = vmatpush3.bf16.msra.mxu0 %v2618_v36 }
 0x615   : > { %2558 = vmatprep.subr.bf16.mxu0 %v2733_v7 }
 0x617   : > { %2531 = vmatmul.mubr.msk.bf16.vlgmr.msra.gmra.mrb[12].mxu0 %vm675_vm2, %v1477_v39 }
 0x618   : > { %2534 = vmatprep.mubr.msk.bf16.mxu0 %vm2734_vm1, %v2733_v7 }
 0x6e2   : > { %v2524_v41 = vpop.f32.mrb[8].mxu0 }
 0x6e3   : > { %v1442_v43 = vpop.f32.mrb[9].mxu0 }
 0x6e4   : > { %1459 = vrot.lane.b32.xlu1 %v1442_v43, %s2740_s26  ;;  %v2525_v45 = vpop.f32.mrb[10].mxu0 }
 0x6e5   : > { %v1445_v32 = vpop.f32.mrb[11].mxu0 }
 0x6e6   : > { %1461 = vrot.lane.b32.xlu0 %v1445_v32, %s2740_s26 }
 0x6e8   : > { %1463 = vrot.lane.b32.xlu1 %v2524_v41, %s2740_s26 }
 0x6ea   : > { %v1546_v23 = vpop.f32.mrb[12].mxu0 }
 0x6eb   : > { %v2532_v44 = vpop.f32.mrb[13].mxu0  ;;  %v1547_v49 = vadd.f32 %v2356_v48, %v1546_v23 }
 0x6ec   : > { %v1549_v46 = vpop.f32.mrb[14].mxu0 }
 0x6ed   : > { %v2533_v47 = vpop.f32.mrb[15].mxu0  ;;  %v1569_v50 = vadd.f32 %v1547_v49, %v2909_v9  ;;  %v1550_v51 = vadd.f32 %v2356_v48, %v1549_v46 }
 0x6ef   : > { %v1577_v52 = vsel %vm675_vm2, %v1569_v50, 0.0  ;;  %v1570_v53 = vadd.f32 %v1550_v51, %v2911_v10 }
 0x6f1   : > { %v1580_v54 = vsel %vm675_vm2, %v1570_v53, 0.0 }
 0x705   : > { %1578 = vadd.xlane.f32.xlu0 %v1577_v52 }
 0x70c   : > { %1581 = vadd.xlane.f32.xlu1 %v1580_v54 }
 0x756   : > { %v1460_v55 = vpop.permute.xlu1 %1459 }
 0x757   : > { %1468 = vst.msk [vmem:[#allocation3 + $0x18] sm:$0xff] %vm1106_vm6, %v1460_v55 }
 0x758   : > { %v1462_v56 = vpop.permute.xlu0 %1461 }
 0x759   : > { %1469 = vst.msk [vmem:[#allocation3 + $0x20] sm:$0xff] %vm1106_vm6, %v1462_v56 }
 0x75a   : > { %v1464_v57 = vpop.permute.xlu1 %1463 }
 0x75b   : > { %1470 = vst.msk [vmem:[#allocation3 + $0x28] sm:$0xff] %vm1106_vm6, %v1464_v57 }
 0x75e   : > { %v1474_v9 = vld [vmem:[#allocation3 + $0x18] sm:$0xff] }
 0x75f   : > { %v1478_v60 = vpack.c.bf16 %v1474_v9, %v1473_v58 }
 0x760   : > { %v1475_v61 = vld [vmem:[#allocation3 + $0x20] sm:$0xff] }
 0x761   : > { %2535 = vmatmul.mubr.msk.bf16.gmra.mrb[16].mxu0 %vm675_vm2, %v1478_v60  ;;  %v3198_v60 = vld [vmem:[%s3416_s21] ss:$0 sm:$0xff] }
 0x762   : > { %2538 = vmatprep.mubr.msk.bf16.mxu0 %vm2734_vm1, %v2733_v7  ;;  %v1476_v10 = vld [vmem:[#allocation3 + $0x28] sm:$0xff] }
 0x763   : > { %v1479_v62 = vpack.c.bf16 %v1476_v10, %v1475_v61 }
 0x769   : > { %2539 = vmatmul.mubr.msk.bf16.gmra.mrb[20].mxu0 %vm675_vm2, %v1479_v62 }
 0x76a   : > { %2574 = vmatprep.mubr.msk.bf16.mxu0 %vm2734_vm1, %v2733_v7 }
 0x792   : > { %v1579_v3 = vpop.xlane.xlu0 %1578 }
 0x793   : > { %v1596_v6 = vmul.f32 0.03125, %v1579_v3 }
 0x795   : > { %v1602_v19 = vsub.f32 %v1569_v50, %v1596_v6 }
 0x797   : > { %v1608_v22 = vmul.f32 %v1602_v19, %v1602_v19 }
 0x799   : > { %v1582_v1 = vpop.xlane.xlu1 %1581  ;;  %v1614_v31 = vsel %vm675_vm2, %v1608_v22, 0.0 }
 0x79a   : > { %v1597_v14 = vmul.f32 0.03125, %v1582_v1 }
 0x79c   : > { %v1603_v26 = vsub.f32 %v1570_v53, %v1597_v14 }
 0x79e   : > { %v1609_v30 = vmul.f32 %v1603_v26, %v1603_v26 }
 0x7a0   : > { %v1617_v33 = vsel %vm675_vm2, %v1609_v30, 0.0 }
 0x834   : > { %v1554_v25 = vpop.f32.mrb[16].mxu0 }
 0x835   : > { %v1555_v63 = vadd.f32 %v2356_v48, %v1554_v25  ;;  %v2536_v2 = vpop.f32.mrb[17].mxu0 }
 0x836   : > { %v1557_v59 = vpop.f32.mrb[18].mxu0 }
 0x837   : > { %v1558_v4 = vadd.f32 %v2356_v48, %v1557_v59  ;;  %v2537_v5 = vpop.f32.mrb[19].mxu0  ;;  %v1571_v0 = vadd.f32 %v1555_v63, %v2916_v12  ;;  %v3206_v63 = vld [vmem:[%s3417_s24] ss:$0 sm:$0xff] }
 0x838   : > { %v2621_v5 = vld [vmem:[%s2871_s28] sm:$0xff]  }
 0x839   : > { %v1583_v8 = vsel %vm675_vm2, %v1571_v0, 0.0  ;;  %v1572_v11 = vadd.f32 %v1558_v4, %v2918_v13  ;;  %2559 = vmatpush3.bf16.msra.mxu0 %v2621_v5 }
 0x83a   : > { %1584 = vadd.xlane.f32.xlu0 %v1583_v8  ;;  %2560 = vmatprep.subr.bf16.mxu0 %v2733_v7  ;;  %v2623_v8 = vld [vmem:[%s2871_s28 + $0x10] sm:$0xff]  }
 0x83b   : > { %v1586_v42 = vsel %vm675_vm2, %v1572_v11, 0.0 }
 0x83c   : > { %v1562_v18 = vpop.f32.mrb[20].mxu0 }
 0x83d   : > { %v1563_v20 = vadd.f32 %v2356_v48, %v1562_v18  ;;  %v2540_v21 = vpop.f32.mrb[21].mxu0 }
 0x83e   : > { %1587 = vadd.xlane.f32.xlu0 %v1586_v42  ;;  %v1565_v24 = vpop.f32.mrb[22].mxu0 }
 0x83f   : > { %v1566_v40 = vadd.f32 %v2356_v48, %v1565_v24  ;;  %v2541_v12 = vpop.f32.mrb[23].mxu0  ;;  %v1573_v17 = vadd.f32 %v1563_v20, %v2928_v15  ;;  %v2620_v15 = vld [vmem:[%s2861_s2 + $0x8] sm:$0xff]  }
 0x840   : > { %2545 = vmatpush3.bf16.msra.mxu1 %v2620_v15  ;;  %v2628_v15 = vld [vmem:[%s2871_s28 + $0x38] sm:$0xff]  }
 0x841   : > { %v1589_v27 = vsel %vm675_vm2, %v1573_v17, 0.0  ;;  %v1574_v13 = vadd.f32 %v1566_v40, %v2930_v16 }
 0x842   : > { %1590 = vadd.xlane.f32.xlu1 %v1589_v27  ;;  %v2626_v27 = vld [vmem:[%s2871_s28 + $0x28] sm:$0xff]  }
 0x843   : > { %v1592_v29 = vsel %vm675_vm2, %v1574_v13, 0.0 }
 0x844   : > { %1593 = vadd.xlane.f32.xlu0 %v1592_v29  ;;  %v2627_v29 = vld [vmem:[%s2871_s28 + $0x30] sm:$0xff]  }
 0x846   : > { %1615 = vadd.xlane.f32.xlu1 %v1614_v31 }
 0x848   : > { %1618 = vadd.xlane.f32.xlu0 %v1617_v33 }
 0x8c7   : > { %v1585_v34 = vpop.xlane.xlu0 %1584 }
 0x8c8   : > { %v1598_v16 = vmul.f32 0.03125, %v1585_v34 }
 0x8ca   : > { %v3173_v35 = vsub.f32 %v1571_v0, %v1598_v16  ;;  %v2622_v0 = vld [vmem:[%s2871_s28 + $0x8] sm:$0xff]  }
 0x8cb   : > { %v1588_v36 = vpop.xlane.xlu0 %1587  ;;  %2561 = vmatpush3.bf16.msra.mxu0 %v2622_v0 }
 0x8cc   : > { %v1599_v37 = vmul.f32 0.03125, %v1588_v36  ;;  %v1610_v38 = vmul.f32 %v3173_v35, %v3173_v35  ;;  %2562 = vmatprep.subr.bf16.mxu0 %v2733_v7 }
 0x8ce   : > { %v3177_v39 = vsub.f32 %v1572_v11, %v1599_v37  ;;  %v1620_v41 = vsel %vm675_vm2, %v1610_v38, 0.0 }
 0x8cf   : > { %1621 = vadd.xlane.f32.xlu1 %v1620_v41  ;;  %v1591_v43 = vpop.xlane.xlu1 %1590  ;;  %2563 = vmatpush3.bf16.msra.mxu0 %v2623_v8 }
 0x8d0   : > { %v1600_v45 = vmul.f32 0.03125, %v1591_v43  ;;  %v1611_v32 = vmul.f32 %v3177_v39, %v3177_v39  ;;  %2564 = vmatprep.subr.bf16.mxu0 %v2733_v7 }
 0x8d1   : > { %v1594_v23 = vpop.xlane.xlu0 %1593 }
 0x8d2   : > { %v3182_v44 = vsub.f32 %v1573_v17, %v1600_v45  ;;  %v1601_v46 = vmul.f32 0.03125, %v1594_v23  ;;  %v1623_v47 = vsel %vm675_vm2, %v1611_v32, 0.0 }
 0x8d3   : > { %1624 = vadd.xlane.f32.xlu0 %v1623_v47  ;;  %v1616_v48 = vpop.xlane.xlu1 %1615 }
 0x8d4   : > { %v3185_v49 = vsub.f32 %v1574_v13, %v1601_v46  ;;  %v1632_v50 = vmul.f32 0.03125, %v1616_v48  ;;  %v1612_v51 = vmul.f32 %v3182_v44, %v3182_v44 }
 0x8d5   : > { %v1619_v52 = vpop.xlane.xlu0 %1618 }
 0x8d6   : > { %v1638_v53 = vadd.f32 1e-05, %v1632_v50  ;;  %v1633_v54 = vmul.f32 0.03125, %v1619_v52  ;;  %v1626_v55 = vsel %vm675_vm2, %v1612_v51, 0.0  ;;  %v1613_v56 = vmul.f32 %v3185_v49, %v3185_v49 }
 0x8d7   : > { %1627 = vadd.xlane.f32.xlu1 %v1626_v55 }
 0x8d8   : > { %2677 = vrsqrt.f32 %v1638_v53  ;;  %v1639_v57 = vadd.f32 1e-05, %v1633_v54  ;;  %v1629_v58 = vsel %vm675_vm2, %v1613_v56, 0.0 }
 0x8d9   : > { %1630 = vadd.xlane.f32.xlu0 %v1629_v58 }
 0x8da   : > { %2679 = vrsqrt.f32 %v1639_v57 }
 0x8e2   : > { %v2678_v9 = vpop.eup %2677 }
 0x8e3   : > { %v1650_v10 = vmul.f32 %v2678_v9, %v1602_v19  ;;  %v2624_v19 = vld [vmem:[%s2871_s28 + $0x18] sm:$0xff]  }
 0x8e4   : > { %v2680_v61 = vpop.eup %2679  ;;  %2565 = vmatpush3.bf16.msra.mxu0 %v2624_v19 }
 0x8e5   : > { %v1662_v62 = vmul.f32 %v3198_v60, %v1650_v10  ;;  %v1651_v25 = vmul.f32 %v2680_v61, %v1603_v26  ;;  %2566 = vmatprep.subr.bf16.mxu0 %v2733_v7  ;;  %v2625_v26 = vld [vmem:[%s2871_s28 + $0x20] sm:$0xff]  }
 0x8e7   : > { %v1663_v2 = vmul.f32 %v3198_v60, %v1651_v25  ;;  %v3210_v3 = vadd.f32 %v3206_v63, %v1662_v62 }
 0x8e8   : > { %2567 = vmatpush3.bf16.msra.mxu0 %v2625_v26 }
 0x8e9   : > { %v3213_v59 = vadd.f32 %v3206_v63, %v1663_v2  ;;  %2568 = vmatprep.subr.bf16.mxu0 %v2733_v7 }
 0x8eb   : > { %v1680_v4 = vpack.c.bf16 %v3213_v59, %v3210_v3 }
 0x8ec   : > { %2569 = vmatpush3.bf16.msra.mxu0 %v2626_v27 }
 0x8ed   : > { %2547 = vmatmul.mubr.msk.bf16.vlgmr.msra.gmra.mrb[32].mxu1 %vm675_vm2, %v1680_v4  ;;  %2570 = vmatprep.subr.bf16.mxu0 %v2733_v7 }
 0x8ee   : > { %2550 = vmatprep.mubr.msk.bf16.mxu1 %vm2734_vm1, %v2733_v7 }
 0x8f0   : > { %2571 = vmatpush3.bf16.msra.mxu0 %v2627_v29 }
 0x8f1   : > { %2572 = vmatprep.subr.bf16.mxu0 %v2733_v7 }
 0x8f4   : > { %2573 = vmatpush3.bf16.msra.mxu0 %v2628_v15 }
 0x95c   : > { %v1622_v1 = vpop.xlane.xlu1 %1621 }
 0x95d   : > { %v1634_v6 = vmul.f32 0.03125, %v1622_v1 }
 0x95f   : > { %v1640_v11 = vadd.f32 1e-05, %v1634_v6 }
 0x960   : > { %v1625_v14 = vpop.xlane.xlu0 %1624 }
 0x961   : > { %2681 = vrsqrt.f32 %v1640_v11  ;;  %v1635_v18 = vmul.f32 0.03125, %v1625_v14 }
 0x963   : > { %v1641_v20 = vadd.f32 1e-05, %v1635_v18 }
 0x964   : > { %v1628_v21 = vpop.xlane.xlu1 %1627 }
 0x965   : > { %2683 = vrsqrt.f32 %v1641_v20  ;;  %v1636_v42 = vmul.f32 0.03125, %v1628_v21 }
 0x966   : > { %v1631_v24 = vpop.xlane.xlu0 %1630 }
 0x967   : > { %v1642_v40 = vadd.f32 1e-05, %v1636_v42  ;;  %v1637_v12 = vmul.f32 0.03125, %v1631_v24 }
 0x969   : > { %2685 = vrsqrt.f32 %v1642_v40  ;;  %v1643_v17 = vadd.f32 1e-05, %v1637_v12 }
 0x96b   : > { %v2682_v13 = vpop.eup %2681  ;;  %2687 = vrsqrt.f32 %v1643_v17 }
 0x96c   : > { %v1652_v22 = vmul.f32 %v2682_v13, %v3173_v35 }
 0x96e   : > { %v1664_v33 = vmul.f32 %v3198_v60, %v1652_v22 }
 0x96f   : > { %v2684_v30 = vpop.eup %2683 }
 0x970   : > { %v1653_v31 = vmul.f32 %v2684_v30, %v3177_v39  ;;  %v3241_v35 = vadd.f32 %v3206_v63, %v1664_v33 }
 0x972   : > { %v1665_v28 = vmul.f32 %v3198_v60, %v1653_v31  ;;  %v2741_v31 = vmov -1.0  }
 0x973   : > { %v2686_v34 = vpop.eup %2685 }
 0x974   : > { %v1654_v16 = vmul.f32 %v2686_v34, %v3182_v44  ;;  %v3244_v36 = vadd.f32 %v3206_v63, %v1665_v28  ;;  %v3268_v44 = vld [vmem:[%s610_s4] ss:$0 sm:$0xff] }
 0x975   : > { %v2688_v37 = vpop.eup %2687 }
 0x976   : > { %v1655_v38 = vmul.f32 %v2688_v37, %v3185_v49  ;;  %v1681_v39 = vpack.c.bf16 %v3244_v36, %v3241_v35  ;;  %v1666_v41 = vmul.f32 %v3198_v60, %v1654_v16 }
 0x978   : > { %2551 = vmatmul.mubr.msk.bf16.gmra.mrb[36].mxu1 %vm675_vm2, %v1681_v39  ;;  %v1667_v43 = vmul.f32 %v3198_v60, %v1655_v38  ;;  %v3258_v32 = vadd.f32 %v3206_v63, %v1666_v41 }
 0x979   : > { %2554 = vmatprep.mubr.msk.bf16.mxu1 %vm2734_vm1, %v2733_v7 }
 0x97a   : > { %v3255_v45 = vadd.f32 %v3206_v63, %v1667_v43 }
 0x97c   : > { %v1682_v23 = vpack.c.bf16 %v3255_v45, %v3258_v32 }
 0x980   : > { %2555 = vmatmul.mubr.msk.bf16.gmra.mrb[40].mxu1 %vm675_vm2, %v1682_v23 }
 0x9c0   : > { %v1749_v46 = vpop.f32.mrb[32].mxu1 }
 0x9c1   : > { %v1750_v47 = vadd.f32 %v3268_v44, %v1749_v46  ;;  %v2548_v48 = vpop.f32.mrb[33].mxu1 }
 0x9c2   : > { %v1752_v49 = vpop.f32.mrb[34].mxu1 }
 0x9c3   : > { %v1778_v50 = vmul.f32 0.70710677, %v1750_v47  ;;  %v1753_v51 = vadd.f32 %v3268_v44, %v1752_v49  ;;  %v2549_v52 = vpop.f32.mrb[35].mxu1  ;;  %v1772_v39 = vmul.f32 0.5, %v1750_v47 }
 0x9c5   : > { %v1796_v53 = vand.u32 2147483647, %v1778_v50  ;;  %v1779_v54 = vmul.f32 0.70710677, %v1753_v51  ;;  %vm1784_vm7 = vcmp.ge.f32.partialorder %v1778_v50, 0.0  ;;  %v1773_v41 = vmul.f32 0.5, %v1753_v51 }
 0x9c6   : > { %v1790_v33 = vsel %vm1784_vm7, 1.0, %v2741_v31 }
 0x9c7   : > { %v1802_v55 = vmul.f32 0.3275911, %v1796_v53  ;;  %v1797_v56 = vand.u32 2147483647, %v1779_v54  ;;  %v1874_v60 = vsub.f32 0.0, %v1796_v53  ;;  %vm1785_vm8 = vcmp.ge.f32.partialorder %v1779_v54, 0.0 }
 0x9c8   : > { %v1791_v16 = vsel %vm1785_vm8, 1.0, %v2741_v31 }
 0x9c9   : > { %v1808_v57 = vadd.f32 1.0, %v1802_v55  ;;  %v1803_v58 = vmul.f32 0.3275911, %v1797_v56  ;;  %v1875_v10 = vsub.f32 0.0, %v1797_v56  ;;  %v1880_v62 = vmul.f32 %v1874_v60, %v1796_v53 }
 0x9cb   : > { %2689 = vrcp.f32 %v1808_v57  ;;  %v1809_v9 = vadd.f32 1.0, %v1803_v58  ;;  %v1881_v4 = vmul.f32 %v1875_v10, %v1797_v56  ;;  %v1886_v5 = vmul.f32 1.442695, %v1880_v62 }
 0x9cd   : > { %2691 = vrcp.f32 %v1809_v9  ;;  %v1888_v11 = vmul.f32 1.442695, %v1881_v4 }
 0x9ce   : > { %2693 = vpow2.f32 %v1886_v5 }
 0x9cf   : > { %2695 = vpow2.f32 %v1888_v11 }
 0x9d5   : > { %v2690_v61 = vpop.eup %2689 }
 0x9d6   : > { %v1820_v25 = vmul.f32 1.0614054, %v2690_v61 }
 0x9d7   : > { %v2692_v63 = vpop.eup %2691 }
 0x9d8   : > { %v1826_v2 = vadd.f32 -1.4531521, %v1820_v25  ;;  %v1821_v0 = vmul.f32 1.0614054, %v2692_v63  ;;  %v2694_v17 = vpop.eup %2693 }
 0x9d9   : > { %v2696_v29 = vpop.eup %2695 }
 0x9da   : > { %v1832_v1 = vmul.f32 %v2690_v61, %v1826_v2  ;;  %v1827_v6 = vadd.f32 -1.4531521, %v1821_v0 }
 0x9dc   : > { %v1838_v8 = vadd.f32 1.4214138, %v1832_v1  ;;  %v1833_v14 = vmul.f32 %v2692_v63, %v1827_v6 }
 0x9de   : > { %v1844_v18 = vmul.f32 %v2690_v61, %v1838_v8  ;;  %v1839_v19 = vadd.f32 1.4214138, %v1833_v14 }
 0x9e0   : > { %v1850_v20 = vadd.f32 -0.28449672, %v1844_v18  ;;  %v1845_v21 = vmul.f32 %v2692_v63, %v1839_v19 }
 0x9e2   : > { %v1856_v42 = vmul.f32 %v2690_v61, %v1850_v20  ;;  %v1851_v24 = vadd.f32 -0.28449672, %v1845_v21 }
 0x9e4   : > { %v1862_v26 = vadd.f32 0.2548296, %v1856_v42  ;;  %v1857_v40 = vmul.f32 %v2692_v63, %v1851_v24 }
 0x9e6   : > { %v1868_v12 = vmul.f32 %v2690_v61, %v1862_v26  ;;  %v1863_v27 = vadd.f32 0.2548296, %v1857_v40 }
 0x9e8   : > { %v1898_v13 = vmul.f32 %v2694_v17, %v1868_v12  ;;  %v1869_v22 = vmul.f32 %v2692_v63, %v1863_v27 }
 0x9ea   : > { %v1904_v30 = vsub.f32 1.0, %v1898_v13  ;;  %v1899_v28 = vmul.f32 %v2696_v29, %v1869_v22 }
 0x9ec   : > { %v1910_v15 = vmul.f32 %v1904_v30, %v1790_v33  ;;  %v1905_v34 = vsub.f32 1.0, %v1899_v28 }
 0x9ee   : > { %v1916_v37 = vadd.f32 1.0, %v1910_v15  ;;  %v1911_v38 = vmul.f32 %v1905_v34, %v1791_v16 }
 0x9f0   : > { %v1917_v43 = vadd.f32 1.0, %v1911_v38  ;;  %v1922_v23 = vmul.f32 %v1916_v37, %v1772_v39 }
 0x9f2   : > { %v1923_v46 = vmul.f32 %v1917_v43, %v1773_v41 }
 0x9f4   : > { %v1928_v48 = vpack.c.bf16 %v1923_v46, %v1922_v23 }
 0x9f6   : > { %2575 = vmatmul.mubr.bf16.vlgmr.msra.gmra.mrb[24].mxu0 %v1928_v48 }
 0x9f7   : > { %2578 = vmatprep.mubr.msk.bf16.mxu0 %vm2734_vm1, %v2733_v7 }
 0xa4b   : > { %v1757_v49 = vpop.f32.mrb[36].mxu1 }
 0xa4c   : > { %v3277_v50 = vadd.f32 %v3268_v44, %v1757_v49  ;;  %v2552_v52 = vpop.f32.mrb[37].mxu1 }
 0xa4d   : > { %v1760_v53 = vpop.f32.mrb[38].mxu1 }
 0xa4e   : > { %v3280_v54 = vmul.f32 0.70710677, %v3277_v50  ;;  %v3283_v47 = vadd.f32 %v3268_v44, %v1760_v53  ;;  %v2553_v51 = vpop.f32.mrb[39].mxu1 }
 0xa50   : > { %v1798_v55 = vand.u32 2147483647, %v3280_v54  ;;  %v3287_v56 = vmul.f32 0.70710677, %v3283_v47  ;;  %vm1786_vm9 = vcmp.ge.f32.partialorder %v3280_v54, 0.0 }
 0xa52   : > { %v1804_v57 = vmul.f32 0.3275911, %v1798_v55  ;;  %v1799_v58 = vand.u32 2147483647, %v3287_v56  ;;  %v1876_v8 = vsub.f32 0.0, %v1798_v55  ;;  %vm1787_vm10 = vcmp.ge.f32.partialorder %v3287_v56, 0.0 }
 0xa53   : > { %v1765_v9 = vpop.f32.mrb[40].mxu1  ;;  %v1793_v54 = vsel %vm1787_vm10, 1.0, %v2741_v31 }
 0xa54   : > { %v1810_v60 = vadd.f32 1.0, %v1804_v57  ;;  %v1805_v10 = vmul.f32 0.3275911, %v1799_v58  ;;  %v2556_v61 = vpop.f32.mrb[41].mxu1  ;;  %v3291_v62 = vadd.f32 %v3268_v44, %v1765_v9  ;;  %v1877_v19 = vsub.f32 0.0, %v1799_v58 }
 0xa55   : > { %v1768_v25 = vpop.f32.mrb[42].mxu1  ;;  %v1882_v21 = vmul.f32 %v1876_v8, %v1798_v55 }
 0xa56   : > { %2697 = vrcp.f32 %v1810_v60  ;;  %v1811_v63 = vadd.f32 1.0, %v1805_v10  ;;  %v2557_v2 = vpop.f32.mrb[43].mxu1  ;;  %v3294_v4 = vmul.f32 0.70710677, %v3291_v62  ;;  %v3297_v5 = vadd.f32 %v3268_v44, %v1768_v25 }
 0xa57   : > { %v1883_v40 = vmul.f32 %v1877_v19, %v1799_v58  ;;  %v1890_v12 = vmul.f32 1.442695, %v1882_v21  ;;  %v1792_v21 = vsel %vm1786_vm9, 1.0, %v2741_v31 }
 0xa58   : > { %2699 = vrcp.f32 %v1811_v63  ;;  %v1800_v0 = vand.u32 2147483647, %v3294_v4  ;;  %v3301_v1 = vmul.f32 0.70710677, %v3297_v5  ;;  %vm1788_vm11 = vcmp.ge.f32.partialorder %v3294_v4, 0.0 }
 0xa59   : > { %v1892_v30 = vmul.f32 1.442695, %v1883_v40 }
 0xa5a   : > { %v1806_v6 = vmul.f32 0.3275911, %v1800_v0  ;;  %v1801_v11 = vand.u32 2147483647, %v3301_v1  ;;  %v1878_v13 = vsub.f32 0.0, %v1800_v0  ;;  %vm1789_vm12 = vcmp.ge.f32.partialorder %v3301_v1, 0.0 }
 0xa5c   : > { %v1812_v14 = vadd.f32 1.0, %v1806_v6  ;;  %v1807_v18 = vmul.f32 0.3275911, %v1801_v11  ;;  %v1879_v28 = vsub.f32 0.0, %v1801_v11  ;;  %v1884_v16 = vmul.f32 %v1878_v13, %v1800_v0 }
 0xa5e   : > { %2701 = vrcp.f32 %v1812_v14  ;;  %v1813_v42 = vadd.f32 1.0, %v1807_v18  ;;  %v1885_v46 = vmul.f32 %v1879_v28, %v1801_v11  ;;  %v1894_v49 = vmul.f32 1.442695, %v1884_v16 }
 0xa60   : > { %v2698_v20 = vpop.eup %2697  ;;  %2703 = vrcp.f32 %v1813_v42  ;;  %v1896_v60 = vmul.f32 1.442695, %v1885_v46 }
 0xa61   : > { %v1822_v24 = vmul.f32 1.0614054, %v2698_v20  ;;  %2705 = vpow2.f32 %v1890_v12 }
 0xa62   : > { %v2700_v44 = vpop.eup %2699  ;;  %2707 = vpow2.f32 %v1892_v30 }
 0xa63   : > { %v1828_v26 = vadd.f32 -1.4531521, %v1822_v24  ;;  %v1823_v17 = vmul.f32 1.0614054, %v2700_v44  ;;  %2709 = vpow2.f32 %v1894_v49  ;;  %v1777_v49 = vmul.f32 0.5, %v3297_v5 }
 0xa64   : > { %2711 = vpow2.f32 %v1896_v60 }
 0xa65   : > { %v1834_v27 = vmul.f32 %v2698_v20, %v1828_v26  ;;  %v1829_v22 = vadd.f32 -1.4531521, %v1823_v17 }
 0xa67   : > { %v1840_v29 = vadd.f32 1.4214138, %v1834_v27  ;;  %v1835_v33 = vmul.f32 %v2700_v44, %v1829_v22 }
 0xa68   : > { %v2702_v15 = vpop.eup %2701 }
 0xa69   : > { %v1846_v34 = vmul.f32 %v2698_v20, %v1840_v29  ;;  %v1841_v37 = vadd.f32 1.4214138, %v1835_v33  ;;  %v1824_v38 = vmul.f32 1.0614054, %v2702_v15  ;;  %v1774_v29 = vmul.f32 0.5, %v3277_v50 }
 0xa6a   : > { %v2704_v41 = vpop.eup %2703  ;;  %v1775_v33 = vmul.f32 0.5, %v3283_v47  ;;  %v1795_v47 = vsel %vm1789_vm12, 1.0, %v2741_v31 }
 0xa6b   : > { %v1852_v39 = vadd.f32 -0.28449672, %v1846_v34  ;;  %v1847_v43 = vmul.f32 %v2700_v44, %v1841_v37  ;;  %v1830_v23 = vadd.f32 -1.4531521, %v1824_v38  ;;  %v1825_v52 = vmul.f32 1.0614054, %v2704_v41  ;;  %v2706_v25 = vpop.eup %2705 }
 0xa6c   : > { %v2708_v14 = vpop.eup %2707 }
 0xa6d   : > { %v1858_v48 = vmul.f32 %v2698_v20, %v1852_v39  ;;  %v1853_v53 = vadd.f32 -0.28449672, %v1847_v43  ;;  %v1836_v51 = vmul.f32 %v2702_v15, %v1830_v23  ;;  %v1831_v57 = vadd.f32 -1.4531521, %v1825_v52  ;;  %v2710_v22 = vpop.eup %2709 }
 0xa6e   : > { %v2712_v16 = vpop.eup %2711  ;;  %v1794_v43 = vsel %vm1788_vm11, 1.0, %v2741_v31  ;;  %v2370_v31 = vld [vmem:[%s618_s17] ss:$0 sm:$0xff] }
 0xa6f   : > { %v1864_v55 = vadd.f32 0.2548296, %v1858_v48  ;;  %v1859_v58 = vmul.f32 %v2700_v44, %v1853_v53  ;;  %v1842_v9 = vadd.f32 1.4214138, %v1836_v51  ;;  %v1837_v61 = vmul.f32 %v2704_v41, %v1831_v57 }
 0xa71   : > { %v1870_v10 = vmul.f32 %v2698_v20, %v1864_v55  ;;  %v1865_v63 = vadd.f32 0.2548296, %v1859_v58  ;;  %v1848_v2 = vmul.f32 %v2702_v15, %v1842_v9  ;;  %v1843_v6 = vadd.f32 1.4214138, %v1837_v61 }
 0xa73   : > { %v1900_v0 = vmul.f32 %v2706_v25, %v1870_v10  ;;  %v1871_v8 = vmul.f32 %v2700_v44, %v1865_v63  ;;  %v1854_v11 = vadd.f32 -0.28449672, %v1848_v2  ;;  %v1849_v19 = vmul.f32 %v2704_v41, %v1843_v6 }
 0xa75   : > { %v1906_v18 = vsub.f32 1.0, %v1900_v0  ;;  %v1901_v20 = vmul.f32 %v2708_v14, %v1871_v8  ;;  %v1860_v42 = vmul.f32 %v2702_v15, %v1854_v11  ;;  %v1855_v26 = vadd.f32 -0.28449672, %v1849_v19 }
 0xa77   : > { %v1912_v24 = vmul.f32 %v1906_v18, %v1792_v21  ;;  %v1907_v40 = vsub.f32 1.0, %v1901_v20  ;;  %v1866_v12 = vadd.f32 0.2548296, %v1860_v42  ;;  %v1861_v17 = vmul.f32 %v2704_v41, %v1855_v26 }
 0xa79   : > { %v1918_v27 = vadd.f32 1.0, %v1912_v24  ;;  %v1913_v44 = vmul.f32 %v1907_v40, %v1793_v54  ;;  %v1872_v13 = vmul.f32 %v2702_v15, %v1866_v12  ;;  %v1867_v30 = vadd.f32 0.2548296, %v1861_v17 }
 0xa7b   : > { %v1919_v28 = vadd.f32 1.0, %v1913_v44  ;;  %v1902_v56 = vmul.f32 %v2710_v22, %v1872_v13  ;;  %v1873_v34 = vmul.f32 %v2704_v41, %v1867_v30  ;;  %v1924_v37 = vmul.f32 %v1918_v27, %v1774_v29 }
 0xa7c   : > { %v1776_v41 = vmul.f32 0.5, %v3291_v62 }
 0xa7d   : > { %v1925_v38 = vmul.f32 %v1919_v28, %v1775_v33  ;;  %v1908_v39 = vsub.f32 1.0, %v1902_v56  ;;  %v1903_v15 = vmul.f32 %v2712_v16, %v1873_v34 }
 0xa7f   : > { %v1914_v23 = vmul.f32 %v1908_v39, %v1794_v43  ;;  %v1929_v50 = vpack.c.bf16 %v1925_v38, %v1924_v37  ;;  %v1909_v46 = vsub.f32 1.0, %v1903_v15 }
 0xa81   : > { %2579 = vmatmul.mubr.bf16.gmra.mrb[28].mxu0 %v1929_v50  ;;  %v1920_v48 = vadd.f32 1.0, %v1914_v23  ;;  %v1915_v4 = vmul.f32 %v1909_v46, %v1795_v47 }
 0xa82   : > { %2582 = vmatprep.mubr.msk.bf16.mxu0 %vm2734_vm1, %v2733_v7 }
 0xa83   : > { %v1921_v52 = vadd.f32 1.0, %v1915_v4  ;;  %v1926_v53 = vmul.f32 %v1920_v48, %v1776_v41 }
 0xa85   : > { %v1927_v1 = vmul.f32 %v1921_v52, %v1777_v49 }
 0xa87   : > { %v1930_v51 = vpack.c.bf16 %v1927_v1, %v1926_v53 }
 0xa89   : > { %2583 = vmatmul.mubr.bf16.gmra.mrb[32].mxu0 %v1930_v51 }
 0xac9   : > { %v2036_v55 = vpop.f32.mrb[24].mxu0 }
 0xaca   : > { %v2037_v57 = vadd.f32 %v2370_v31, %v2036_v55  ;;  %v2576_v58 = vpop.f32.mrb[25].mxu0 }
 0xacb   : > { %v2039_v9 = vpop.f32.mrb[26].mxu0 }
 0xacc   : > { %v2040_v60 = vadd.f32 %v2370_v31, %v2039_v9  ;;  %v2577_v7 = vpop.f32.mrb[27].mxu0  ;;  %v2059_v62 = vadd.f32 %v2037_v57, %v3210_v3  ;;  %v2379_v9 = vld [vmem:[%s621_s20] ss:$0 sm:$0xff]  ;;  %s3418_s20 = sld [smem:[#allocation9_spill]] (!%p2381_p5) }
 0xace   : > { %v2067_v5 = vsel %vm675_vm2, %v2059_v62, 0.0  ;;  %v2060_v10 = vadd.f32 %v2040_v60, %v3213_v59 }
 0xacf   : > { %2068 = vadd.xlane.f32.xlu1 %v2067_v5 }
 0xad0   : > { %v2070_v61 = vsel %vm675_vm2, %v2060_v10, 0.0 }
 0xad1   : > { %2071 = vadd.xlane.f32.xlu0 %v2070_v61 }
 0xb54   : > { %v2044_v25 = vpop.f32.mrb[28].mxu0 }
 0xb55   : > { %v2045_v63 = vadd.f32 %v2370_v31, %v2044_v25  ;;  %v2580_v2 = vpop.f32.mrb[29].mxu0 }
 0xb56   : > { %v2047_v0 = vpop.f32.mrb[30].mxu0 }
 0xb57   : > { %v2048_v6 = vadd.f32 %v2370_v31, %v2047_v0  ;;  %v2581_v8 = vpop.f32.mrb[31].mxu0  ;;  %v2061_v11 = vadd.f32 %v2045_v63, %v3241_v35 }
 0xb59   : > { %v2073_v14 = vsel %vm675_vm2, %v2061_v11, 0.0  ;;  %v2062_v3 = vadd.f32 %v2048_v6, %v3244_v36 }
 0xb5a   : > { %2074 = vadd.xlane.f32.xlu1 %v2073_v14 }
 0xb5b   : > { %v2076_v18 = vsel %vm675_vm2, %v2062_v3, 0.0 }
 0xb5c   : > { %2077 = vadd.xlane.f32.xlu0 %v2076_v18  ;;  %v2069_v59 = vpop.xlane.xlu1 %2068  ;;  %v2052_v19 = vpop.f32.mrb[32].mxu0 }
 0xb5d   : > { %v2085_v21 = vmul.f32 0.03125, %v2069_v59  ;;  %v2053_v20 = vadd.f32 %v2370_v31, %v2052_v19  ;;  %v2584_v42 = vpop.f32.mrb[33].mxu0 }
 0xb5e   : > { %v2072_v24 = vpop.xlane.xlu0 %2071  ;;  %v2055_v12 = vpop.f32.mrb[34].mxu0 }
 0xb5f   : > { %v2091_v26 = vsub.f32 %v2059_v62, %v2085_v21  ;;  %v2086_v40 = vmul.f32 0.03125, %v2072_v24  ;;  %v2056_v54 = vadd.f32 %v2370_v31, %v2055_v12  ;;  %v2585_v17 = vpop.f32.mrb[35].mxu0  ;;  %v2063_v35 = vadd.f32 %v2053_v20, %v3258_v32  ;;  %v2380_v62 = vld [vmem:[%s624_s1] ss:$0 sm:$0xff] }
 0xb61   : > { %v2092_v27 = vsub.f32 %v2060_v10, %v2086_v40  ;;  %v2079_v36 = vsel %vm675_vm2, %v2063_v35, 0.0  ;;  %v2064_v44 = vadd.f32 %v2056_v54, %v3255_v45  ;;  %v2097_v13 = vmul.f32 %v2091_v26, %v2091_v26 }
 0xb62   : > { %2080 = vadd.xlane.f32.xlu1 %v2079_v36 }
 0xb63   : > { %v2082_v22 = vsel %vm675_vm2, %v2064_v44, 0.0  ;;  %v2098_v29 = vmul.f32 %v2092_v27, %v2092_v27  ;;  %v2103_v30 = vsel %vm675_vm2, %v2097_v13, 0.0 }
 0xb64   : > { %2083 = vadd.xlane.f32.xlu0 %v2082_v22 }
 0xb65   : > { %v2106_v33 = vsel %vm675_vm2, %v2098_v29, 0.0 }
 0xb66   : > { %2104 = vadd.xlane.f32.xlu1 %v2103_v30 }
 0xb68   : > { %2107 = vadd.xlane.f32.xlu0 %v2106_v33 }
 0xbe7   : > { %v2075_v28 = vpop.xlane.xlu1 %2074 }
 0xbe8   : > { %v2087_v56 = vmul.f32 0.03125, %v2075_v28 }
 0xbe9   : > { %v2078_v32 = vpop.xlane.xlu0 %2077 }
 0xbea   : > { %v2093_v34 = vsub.f32 %v2061_v11, %v2087_v56  ;;  %v2088_v16 = vmul.f32 0.03125, %v2078_v32 }
 0xbec   : > { %v2094_v37 = vsub.f32 %v2062_v3, %v2088_v16  ;;  %v2099_v38 = vmul.f32 %v2093_v34, %v2093_v34 }
 0xbee   : > { %v2109_v45 = vsel %vm675_vm2, %v2099_v38, 0.0  ;;  %v2100_v39 = vmul.f32 %v2094_v37, %v2094_v37 }
 0xbef   : > { %2110 = vadd.xlane.f32.xlu1 %v2109_v45  ;;  %v2081_v43 = vpop.xlane.xlu1 %2080 }
 0xbf0   : > { %v2112_v15 = vsel %vm675_vm2, %v2100_v39, 0.0  ;;  %v2089_v23 = vmul.f32 0.03125, %v2081_v43 }
 0xbf1   : > { %2113 = vadd.xlane.f32.xlu0 %v2112_v15  ;;  %v2084_v50 = vpop.xlane.xlu0 %2083 }
 0xbf2   : > { %v2095_v46 = vsub.f32 %v2063_v35, %v2089_v23  ;;  %v2090_v47 = vmul.f32 0.03125, %v2084_v50 }
 0xbf3   : > { %v2105_v48 = vpop.xlane.xlu1 %2104 }
 0xbf4   : > { %v2096_v4 = vsub.f32 %v2064_v44, %v2090_v47  ;;  %v2121_v41 = vmul.f32 0.03125, %v2105_v48  ;;  %v2101_v49 = vmul.f32 %v2095_v46, %v2095_v46 }
 0xbf5   : > { %v2108_v52 = vpop.xlane.xlu0 %2107 }
 0xbf6   : > { %v2127_v53 = vadd.f32 1e-05, %v2121_v41  ;;  %v2122_v1 = vmul.f32 0.03125, %v2108_v52  ;;  %v2115_v51 = vsel %vm675_vm2, %v2101_v49, 0.0  ;;  %v2102_v31 = vmul.f32 %v2096_v4, %v2096_v4 }
 0xbf7   : > { %2116 = vadd.xlane.f32.xlu1 %v2115_v51 }
 0xbf8   : > { %2713 = vrsqrt.f32 %v2127_v53  ;;  %v2128_v55 = vadd.f32 1e-05, %v2122_v1  ;;  %v2118_v57 = vsel %vm675_vm2, %v2102_v31, 0.0 }
 0xbf9   : > { %2119 = vadd.xlane.f32.xlu0 %v2118_v57 }
 0xbfa   : > { %2715 = vrsqrt.f32 %v2128_v55 }
 0xc02   : > { %v2714_v58 = vpop.eup %2713 }
 0xc03   : > { %v2139_v60 = vmul.f32 %v2714_v58, %v2091_v26 }
 0xc04   : > { %v2716_v7 = vpop.eup %2715 }
 0xc05   : > { %v2151_v5 = vmul.f32 %v2379_v9, %v2139_v60  ;;  %v2140_v10 = vmul.f32 %v2716_v7, %v2092_v27 }
 0xc07   : > { %v2163_v61 = vadd.f32 %v2380_v62, %v2151_v5  ;;  %v2152_v25 = vmul.f32 %v2379_v9, %v2140_v10 }
 0xc09   : > { %2169 = vst.msk [vmem:[#allocation2] sm:$0xff] %vm675_vm2, %v2163_v61  ;;  %v2164_v63 = vadd.f32 %v2380_v62, %v2152_v25  ;;  %2179 = vst.msk [vmem:[%s3418_s20] sm:$0xff] (!%p2381_p5), %vm675_vm2, %v2163_v61 }
 0xc0b   : > { %2170 = vst.msk [vmem:[#allocation2 + $0x8] sm:$0xff] %vm675_vm2, %v2164_v63  ;;  %2180 = vst.msk [vmem:[%s3418_s20 + $0x8] sm:$0xff] (!%p2381_p5), %vm675_vm2, %v2164_v63 }
 0xc7c   : > { %v2111_v2 = vpop.xlane.xlu1 %2110 }
 0xc7d   : > { %v2123_v0 = vmul.f32 0.03125, %v2111_v2 }
 0xc7e   : > { %v2114_v6 = vpop.xlane.xlu0 %2113 }
 0xc7f   : > { %v2129_v8 = vadd.f32 1e-05, %v2123_v0  ;;  %v2124_v11 = vmul.f32 0.03125, %v2114_v6 }
 0xc81   : > { %2717 = vrsqrt.f32 %v2129_v8  ;;  %v2130_v14 = vadd.f32 1e-05, %v2124_v11 }
 0xc83   : > { %2719 = vrsqrt.f32 %v2130_v14 }
 0xc84   : > { %v2117_v3 = vpop.xlane.xlu1 %2116 }
 0xc85   : > { %v2125_v18 = vmul.f32 0.03125, %v2117_v3 }
 0xc86   : > { %v2120_v59 = vpop.xlane.xlu0 %2119 }
 0xc87   : > { %v2131_v19 = vadd.f32 1e-05, %v2125_v18  ;;  %v2126_v21 = vmul.f32 0.03125, %v2120_v59 }
 0xc89   : > { %2721 = vrsqrt.f32 %v2131_v19  ;;  %v2132_v20 = vadd.f32 1e-05, %v2126_v21 }
 0xc8b   : > { %v2718_v42 = vpop.eup %2717  ;;  %2723 = vrsqrt.f32 %v2132_v20 }
 0xc8c   : > { %v2141_v24 = vmul.f32 %v2718_v42, %v2093_v34 }
 0xc8d   : > { %v2720_v26 = vpop.eup %2719 }
 0xc8e   : > { %v2153_v40 = vmul.f32 %v2379_v9, %v2141_v24  ;;  %v2142_v12 = vmul.f32 %v2720_v26, %v2094_v37 }
 0xc90   : > { %v2165_v54 = vadd.f32 %v2380_v62, %v2153_v40  ;;  %v2154_v17 = vmul.f32 %v2379_v9, %v2142_v12 }
 0xc92   : > { %2171 = vst.msk [vmem:[#allocation2 + $0x10] sm:$0xff] %vm675_vm2, %v2165_v54  ;;  %v2166_v35 = vadd.f32 %v2380_v62, %v2154_v17  ;;  %2181 = vst.msk [vmem:[%s3418_s20 + $0x10] sm:$0xff] (!%p2381_p5), %vm675_vm2, %v2165_v54 }
 0xc93   : > { %v2722_v27 = vpop.eup %2721 }
 0xc94   : > { %2172 = vst.msk [vmem:[#allocation2 + $0x18] sm:$0xff] %vm675_vm2, %v2166_v35  ;;  %v2143_v36 = vmul.f32 %v2722_v27, %v2095_v46  ;;  %2182 = vst.msk [vmem:[%s3418_s20 + $0x18] sm:$0xff] (!%p2381_p5), %vm675_vm2, %v2166_v35 }
 0xc95   : > { %v2724_v44 = vpop.eup %2723 }
 0xc96   : > { %v2155_v13 = vmul.f32 %v2379_v9, %v2143_v36  ;;  %v2144_v22 = vmul.f32 %v2724_v44, %v2096_v4  ;;  %2178 = sbr.rel (%p2381_p5) target bundleno = 3229 (0xc9d), region = 84 }
 0xc98   : > { %v2167_v29 = vadd.f32 %v2380_v62, %v2155_v13  ;;  %v2156_v30 = vmul.f32 %v2379_v9, %v2144_v22 }
 0xc9a   : > { %2173 = vst.msk [vmem:[#allocation2 + $0x20] sm:$0xff] %vm675_vm2, %v2167_v29  ;;  %v2168_v33 = vadd.f32 %v2380_v62, %v2156_v30  ;;  %2183 = vst.msk [vmem:[%s3418_s20 + $0x20] sm:$0xff] (!%p2381_p5), %vm675_vm2, %v2167_v29 }
 0xc9c   : > { %2174 = vst.msk [vmem:[#allocation2 + $0x28] sm:$0xff] %vm675_vm2, %v2168_v33  ;;  %2184 = vst.msk [vmem:[%s3418_s20 + $0x28] sm:$0xff] (!%p2381_p5), %vm675_vm2, %v2168_v33 }
 0xc9d PF: > { %s3419_s4 = sld [smem:[#allocation4_spill]] }
 0xca3   : > { %s24_s29 = sadd.s32 1, %s3419_s4  }
 0xca4   : > { %p21_p6 = scmp.ge.s32.totalorder %s24_s29, 4  }
 0xca6   :  { %23 = sbr.rel (!%p21_p6) target bundleno = 5 (0x5), region = 143 }

</bundles_post_ra>
